<compile_context>
chip_gen: v7x
topology: tpu7x:2x2x1
jax: 0.10.0
libtpu: 0.0.40
codegen_flags: <defaults>
</compile_context>

<pallas_src>
import functools

import jax
import jax.numpy as jnp
from jax.experimental import pallas as pl
from jax.experimental.pallas import tpu as pltpu

LANE = 128  # pad tiny output widths up to one lane group


# -----------------------------------------------------------------------------
# Kernel: fused multi-head MLP.
#   out[hd] = [sigmoid]( relu(x @ W1'[hd] + b1'[hd]) @ W2[hd] + b2[hd] )
# Grid = (num_heads, H // th).  W1'/b1' have Linear bias + BatchNorm1d (eval)
# pre-folded in.  The output block is grid-invariant along the hidden axis and
# is used directly as the f32 accumulator (no scratch).
# -----------------------------------------------------------------------------
def _multi_head_mlp_kernel(x_ref, w1_ref, b1_ref, w2_ref, b2_ref, out_ref,
                           *, apply_sigmoid):
    h_idx = pl.program_id(1)

    # First matmul on this hidden block: [M, K] @ [K, th] -> f32 [M, th]
    h = jnp.dot(x_ref[...], w1_ref[...], preferred_element_type=jnp.float32)
    h = jnp.maximum(h + b1_ref[...], 0.0)           # folded bias+BN, ReLU (f32)
    # Second matmul contribution: [M, th] @ [th, N] -> f32 [M, N]
    contrib = jnp.dot(h.astype(w2_ref.dtype), w2_ref[...],
                      preferred_element_type=jnp.float32)

    # Accumulate directly into the (resident) output block.
    @pl.when(h_idx == 0)
    def _():
        out_ref[...] = contrib

    @pl.when(h_idx > 0)
    def _():
        out_ref[...] += contrib

    @pl.when(h_idx == pl.num_programs(1) - 1)
    def _():
        o = out_ref[...] + b2_ref[...]
        if apply_sigmoid:
            o = jax.nn.sigmoid(o)
        out_ref[...] = o


# -----------------------------------------------------------------------------
# Wrapper
# -----------------------------------------------------------------------------
def multi_head_mlp(x, params, *, apply_sigmoid, hidden_block=None):
    """x: [M, K].  params = (W1s [NH,K,H] bf16, b1s [NH,1,H] f32,
                             W2s [NH,H,N] bf16, b2s [NH,1,N] f32).
    Returns [NH, M, N] float32 (same x fed to every head)."""
    w1, b1, w2, b2 = params
    NH, K, H = w1.shape
    N = w2.shape[-1]
    M = x.shape[0]
    th = H if hidden_block is None else min(hidden_block, H)
    assert H % th == 0, "hidden dim must be divisible by the hidden tile"

    x = x.astype(w1.dtype)  # stream activations in the weight dtype (bf16)

    kernel = functools.partial(_multi_head_mlp_kernel,
                               apply_sigmoid=apply_sigmoid)

    flops = 2 * NH * M * (K * H + H * N)
    bytes_accessed = (w1.size * w1.dtype.itemsize + w2.size * w2.dtype.itemsize
                      + b1.size * b1.dtype.itemsize + b2.size * b2.dtype.itemsize
                      + x.size * x.dtype.itemsize + NH * M * N * 4)
    cost = pl.CostEstimate(flops=int(flops),
                           transcendentals=int(NH * M * N) if apply_sigmoid else 0,
                           bytes_accessed=int(bytes_accessed))

    return pl.pallas_call(
        kernel,
        out_shape=jax.ShapeDtypeStruct((NH, M, N), jnp.float32),
        grid_spec=pltpu.PrefetchScalarGridSpec(
            num_scalar_prefetch=0,
            grid=(NH, H // th),
            in_specs=[
                pl.BlockSpec((M, K), lambda hd, h: (0, 0)),             # x (shared)
                pl.BlockSpec((None, K, th), lambda hd, h: (hd, 0, h)),  # W1' block
                pl.BlockSpec((None, 1, th), lambda hd, h: (hd, 0, h)),  # b1' block
                pl.BlockSpec((None, th, N), lambda hd, h: (hd, h, 0)),  # W2 block
                pl.BlockSpec((None, 1, N), lambda hd, h: (hd, 0, 0)),   # b2
            ],
            out_specs=pl.BlockSpec((None, M, N), lambda hd, h: (hd, 0, 0)),
        ),
        compiler_params=pltpu.CompilerParams(
            dimension_semantics=("parallel", "arbitrary")),
        cost_estimate=cost,
    )(x, w1, b1, w2, b2)


# -----------------------------------------------------------------------------
# Parameter construction (matches nn.Module shapes; BN/bias pre-folded)
# -----------------------------------------------------------------------------
def make_mlp_params(key, input_dim, hidden_dim, output_dim, *, pad_out_to=None):
    """Returns ((W1', b1', W2, b2), valid_output_dim) for one head.

    W1' = W1 * bn_scale (per hidden column), b1' = b1 * bn_scale + bn_shift,
    where bn_scale = gamma / sqrt(var + eps), bn_shift = beta - mean * scale.
    Weights stored bf16 (MXU-native); biases kept f32 for the f32 epilogue.
    Dropout (eval mode) is the identity and is omitted.
    """
    k1, k2, k3, k4, k5, k6 = jax.random.split(key, 6)
    # fc1: Linear(input_dim, hidden_dim); stored transposed for x @ W.
    w1 = jax.random.normal(k1, (input_dim, hidden_dim), jnp.float32) * 0.02
    b1 = jax.random.normal(k2, (1, hidden_dim), jnp.float32) * 0.02
    # BatchNorm1d(hidden_dim), eval mode.
    gamma = 1.0 + jax.random.normal(k3, (1, hidden_dim), jnp.float32) * 0.01
    beta = jax.random.normal(k4, (1, hidden_dim), jnp.float32) * 0.01
    running_mean = jnp.zeros((1, hidden_dim), jnp.float32)
    running_var = jnp.ones((1, hidden_dim), jnp.float32)
    eps = 1e-5
    scale = gamma / jnp.sqrt(running_var + eps)
    shift = beta - running_mean * scale
    w1_f = w1 * scale                       # column-wise fold
    b1_f = b1 * scale + shift
    # fc2: Linear(hidden_dim, output_dim).
    w2 = jax.random.normal(k5, (hidden_dim, output_dim), jnp.float32) * 0.02
    b2 = jax.random.normal(k6, (1, output_dim), jnp.float32) * 0.02
    # Pad tiny output widths to a lane-aligned width; caller slices them back.
    if pad_out_to is not None and output_dim < pad_out_to:
        pad = pad_out_to - output_dim
        w2 = jnp.pad(w2, ((0, 0), (0, pad)))
        b2 = jnp.pad(b2, ((0, 0), (0, pad)))
    params = (w1_f.astype(jnp.bfloat16), b1_f.astype(jnp.float32),
              w2.astype(jnp.bfloat16), b2.astype(jnp.float32))
    return params, output_dim


def stack_head_params(*param_sets):
    """Stack per-head (W1', b1', W2, b2) tuples along a new leading head axis."""
    return tuple(jnp.stack(ts, axis=0) for ts in zip(*param_sets))


# -----------------------------------------------------------------------------
# anoCEF forward (post-backbone portion)
# -----------------------------------------------------------------------------
def anocef_forward(feat1, resnet_out1, resnet_out2,
                   clsfer_p, cls_dim, fer_dim, head_p, head_dim):
    B = feat1.shape[0]
    # Feature fusion in plain JAX (tiny; a pallas_call here costs more than it).
    feat2 = (resnet_out1 + resnet_out2) * 0.5
    feat = jnp.concatenate([feat1, feat2], axis=1)

    # Batch-third split (matches the PyTorch slicing).
    a = feat[: B // 3, :]
    b = feat[B // 3: B // 3 * 2, :]
    c = feat[B // 3 * 2:, :]

    # cls + FERhead: same input `a`, same K/H and same padded N -> one call
    # with a 2-long "parallel" head axis (megacore-shardable on v7x).
    out_af = multi_head_mlp(a, clsfer_p, apply_sigmoid=True)
    out_cls = out_af[0, :, :cls_dim]
    out_fer = out_af[1, :, :fer_dim]

    # head(b) and head(c) share weights -> one call on concat([b, c]).
    nb = b.shape[0]
    bc = jnp.concatenate([b, c], axis=0)
    out_bc = multi_head_mlp(bc, head_p, apply_sigmoid=False)[0, :, :head_dim]
    out_b, out_c = out_bc[:nb], out_bc[nb:]
    return out_cls, out_fer, out_b, out_c


# -----------------------------------------------------------------------------
# Main
# -----------------------------------------------------------------------------
if __name__ == "__main__":
    key = jax.random.PRNGKey(0)
    k_f1, k_r1, k_r2, k_cls, k_head, k_fer = jax.random.split(key, 6)

    # Small shapes: batch divisible by 3; lengths = feat1_dim + resnet_dim.
    B = 6
    FEAT1_DIM = 128        # posterV2 feature width (backbone output)
    RESNET_DIM = 128       # resnet50 feature width (backbone output)
    LENGTHS = FEAT1_DIM + RESNET_DIM   # 256
    HIDDEN = 2048          # hard-coded in anoCEF.__init__

    # Pre-extracted backbone features (backbones themselves are untranslated).
    feat1 = jax.random.normal(k_f1, (B, FEAT1_DIM), jnp.float32)
    resnet_out1 = jax.random.normal(k_r1, (B, RESNET_DIM), jnp.float32)
    resnet_out2 = jax.random.normal(k_r2, (B, RESNET_DIM), jnp.float32)

    # Heads: cls = MLP(lengths, 2048, 7), FERhead = MLP(lengths, 2048, 6)
    # (both padded to 128 output lanes and stacked), head = MLP(lengths, 2048, lengths).
    cls_params, cls_dim = make_mlp_params(k_cls, LENGTHS, HIDDEN, 7,
                                          pad_out_to=LANE)
    fer_params, fer_dim = make_mlp_params(k_fer, LENGTHS, HIDDEN, 6,
                                          pad_out_to=LANE)
    head_params, head_dim = make_mlp_params(k_head, LENGTHS, HIDDEN, LENGTHS)

    clsfer_stacked = stack_head_params(cls_params, fer_params)   # NH = 2
    head_stacked = stack_head_params(head_params)                # NH = 1

    outs = anocef_forward(feat1, resnet_out1, resnet_out2,
                          clsfer_stacked, cls_dim, fer_dim,
                          head_stacked, head_dim)
    outs = jax.block_until_ready(outs)

    out_cls, out_fer, out_b, out_c = outs
    assert out_cls.shape == (B // 3, 7)
    assert out_fer.shape == (B // 3, 6)
    assert out_b.shape == (B // 3, LENGTHS)
    assert out_c.shape == (B - B // 3 * 2, LENGTHS)
    print("KERNEL_OK")
</pallas_src>

<mosaic_0001>
module attributes {stable_mosaic.version = 11 : i64} {
  func.func @_multi_head_mlp_kernel(%arg0: i32, %arg1: i32, %arg2: memref<2x256xbf16, #tpu.memory_space<vmem>>, %arg3: memref<1x256x2048xbf16, #tpu.memory_space<vmem>>, %arg4: memref<1x1x2048xf32, #tpu.memory_space<vmem>>, %arg5: memref<1x2048x128xbf16, #tpu.memory_space<vmem>>, %arg6: memref<1x1x128xf32, #tpu.memory_space<vmem>>, %arg7: memref<1x2x128xf32, #tpu.memory_space<vmem>>) attributes {dimension_semantics = [#tpu.dimension_semantics<parallel>, #tpu.dimension_semantics<arbitrary>], iteration_bounds = array<i64: 2, 1>, scalar_prefetch = 0 : i64, scratch_operands = 0 : i64, tpu.core_type = #tpu.core_type<tc>, window_params = [{pipeline_mode = #tpu.pipeline_mode<synchronous>, transform_indices = @transform_0, window_bounds = array<i64: 2, 256>}, {transform_indices = @transform_1, window_bounds = array<i64: 1, 256, 2048>}, {transform_indices = @transform_2, window_bounds = array<i64: 1, 1, 2048>}, {transform_indices = @transform_3, window_bounds = array<i64: 1, 2048, 128>}, {transform_indices = @transform_4, window_bounds = array<i64: 1, 1, 128>}, {transform_indices = @transform_5, window_bounds = array<i64: 1, 2, 128>}]} {
    %c0 = arith.constant 0 : index
    %c0_0 = arith.constant 0 : index
    %0 = vector.load %arg2[%c0, %c0_0] : memref<2x256xbf16, #tpu.memory_space<vmem>>, vector<2x256xbf16>
    %c0_1 = arith.constant 0 : index
    %c0_2 = arith.constant 0 : index
    %c0_3 = arith.constant 0 : index
    %1 = vector.load %arg3[%c0_1, %c0_2, %c0_3] : memref<1x256x2048xbf16, #tpu.memory_space<vmem>>, vector<1x256x2048xbf16>
    %2 = vector.shape_cast %1 : vector<1x256x2048xbf16> to vector<256x2048xbf16>
    %cst = arith.constant dense<0.000000e+00> : vector<2x2048xf32>
    %3 = tpu.matmul %0, %2, %cst {dimension_numbers = #tpu.dot_dimension_numbers<[1], [0], [0], [1], [0, 0, 1, 1], [], []>} : vector<2x256xbf16>, vector<256x2048xbf16>, vector<2x2048xf32> -> vector<2x2048xf32>
    %c0_4 = arith.constant 0 : index
    %c0_5 = arith.constant 0 : index
    %c0_6 = arith.constant 0 : index
    %4 = vector.load %arg4[%c0_4, %c0_5, %c0_6] : memref<1x1x2048xf32, #tpu.memory_space<vmem>>, vector<1x1x2048xf32>
    %5 = vector.shape_cast %4 : vector<1x1x2048xf32> to vector<1x2048xf32>
    %6 = vector.broadcast %5 : vector<1x2048xf32> to vector<2x2048xf32>
    %7 = arith.addf %3, %6 : vector<2x2048xf32>
    %cst_7 = arith.constant 0.000000e+00 : f32
    %8 = vector.broadcast %cst_7 : f32 to vector<2x2048xf32>
    %9 = arith.maximumf %7, %8 : vector<2x2048xf32>
    %10 = arith.truncf %9 : vector<2x2048xf32> to vector<2x2048xbf16>
    %c0_8 = arith.constant 0 : index
    %c0_9 = arith.constant 0 : index
    %c0_10 = arith.constant 0 : index
    %11 = vector.load %arg5[%c0_8, %c0_9, %c0_10] : memref<1x2048x128xbf16, #tpu.memory_space<vmem>>, vector<1x2048x128xbf16>
    %12 = vector.shape_cast %11 : vector<1x2048x128xbf16> to vector<2048x128xbf16>
    %cst_11 = arith.constant dense<0.000000e+00> : vector<2x128xf32>
    %13 = tpu.matmul %10, %12, %cst_11 {dimension_numbers = #tpu.dot_dimension_numbers<[1], [0], [0], [1], [0, 0, 1, 1], [], []>} : vector<2x2048xbf16>, vector<2048x128xbf16>, vector<2x128xf32> -> vector<2x128xf32>
    %c0_i32 = arith.constant 0 : i32
    %14 = arith.cmpi eq, %arg1, %c0_i32 : i32
    %15 = arith.extui %14 : i1 to i32
    %c0_i32_12 = arith.constant 0 : i32
    %16 = arith.cmpi ne, %15, %c0_i32_12 : i32
    scf.if %16 {
      %c0_17 = arith.constant 0 : index
      %c0_18 = arith.constant 0 : index
      %c0_19 = arith.constant 0 : index
      %23 = vector.load %arg7[%c0_17, %c0_18, %c0_19] : memref<1x2x128xf32, #tpu.memory_space<vmem>>, vector<1x2x128xf32>
      %24 = vector.shape_cast %23 : vector<1x2x128xf32> to vector<2x128xf32>
      %25 = vector.shape_cast %13 : vector<2x128xf32> to vector<1x2x128xf32>
      tpu.vector_store %arg7[%c0_17, %c0_18, %c0_19], %25 {strides = array<i32>} : memref<1x2x128xf32, #tpu.memory_space<vmem>>, vector<1x2x128xf32>,
    } else {
    }
    %c0_i32_13 = arith.constant 0 : i32
    %17 = arith.cmpi sgt, %arg1, %c0_i32_13 : i32
    %18 = arith.extui %17 : i1 to i32
    %c0_i32_14 = arith.constant 0 : i32
    %19 = arith.cmpi ne, %18, %c0_i32_14 : i32
    scf.if %19 {
      %c0_17 = arith.constant 0 : index
      %c0_18 = arith.constant 0 : index
      %c0_19 = arith.constant 0 : index
      %23 = vector.load %arg7[%c0_17, %c0_18, %c0_19] : memref<1x2x128xf32, #tpu.memory_space<vmem>>, vector<1x2x128xf32>
      %24 = vector.shape_cast %23 : vector<1x2x128xf32> to vector<2x128xf32>
      %25 = arith.addf %24, %13 : vector<2x128xf32>
      %c0_20 = arith.constant 0 : index
      %c0_21 = arith.constant 0 : index
      %c0_22 = arith.constant 0 : index
      %26 = vector.load %arg7[%c0_20, %c0_21, %c0_22] : memref<1x2x128xf32, #tpu.memory_space<vmem>>, vector<1x2x128xf32>
      %27 = vector.shape_cast %26 : vector<1x2x128xf32> to vector<2x128xf32>
      %28 = vector.shape_cast %25 : vector<2x128xf32> to vector<1x2x128xf32>
      tpu.vector_store %arg7[%c0_20, %c0_21, %c0_22], %28 {strides = array<i32>} : memref<1x2x128xf32, #tpu.memory_space<vmem>>, vector<1x2x128xf32>,
    } else {
    }
    %c0_i32_15 = arith.constant 0 : i32
    %20 = arith.cmpi eq, %arg1, %c0_i32_15 : i32
    %21 = arith.extui %20 : i1 to i32
    %c0_i32_16 = arith.constant 0 : i32
    %22 = arith.cmpi ne, %21, %c0_i32_16 : i32
    scf.if %22 {
      %c0_17 = arith.constant 0 : index
      %c0_18 = arith.constant 0 : index
      %c0_19 = arith.constant 0 : index
      %23 = vector.load %arg7[%c0_17, %c0_18, %c0_19] : memref<1x2x128xf32, #tpu.memory_space<vmem>>, vector<1x2x128xf32>
      %24 = vector.shape_cast %23 : vector<1x2x128xf32> to vector<2x128xf32>
      %c0_20 = arith.constant 0 : index
      %c0_21 = arith.constant 0 : index
      %c0_22 = arith.constant 0 : index
      %25 = vector.load %arg6[%c0_20, %c0_21, %c0_22] : memref<1x1x128xf32, #tpu.memory_space<vmem>>, vector<1x1x128xf32>
      %26 = vector.shape_cast %25 : vector<1x1x128xf32> to vector<1x128xf32>
      %27 = vector.broadcast %26 : vector<1x128xf32> to vector<2x128xf32>
      %28 = arith.addf %24, %27 : vector<2x128xf32>
      %29 = arith.negf %28 : vector<2x128xf32>
      %30 = math.exp %29 : vector<2x128xf32>
      %cst_23 = arith.constant 1.000000e+00 : f32
      %31 = vector.broadcast %cst_23 : f32 to vector<2x128xf32>
      %32 = arith.addf %31, %30 : vector<2x128xf32>
      %33 = arith.divf %31, %32 : vector<2x128xf32>
      %c0_24 = arith.constant 0 : index
      %c0_25 = arith.constant 0 : index
      %c0_26 = arith.constant 0 : index
      %34 = vector.load %arg7[%c0_24, %c0_25, %c0_26] : memref<1x2x128xf32, #tpu.memory_space<vmem>>, vector<1x2x128xf32>
      %35 = vector.shape_cast %34 : vector<1x2x128xf32> to vector<2x128xf32>
      %36 = vector.shape_cast %33 : vector<2x128xf32> to vector<1x2x128xf32>
      tpu.vector_store %arg7[%c0_24, %c0_25, %c0_26], %36 {strides = array<i32>} : memref<1x2x128xf32, #tpu.memory_space<vmem>>, vector<1x2x128xf32>,
    } else {
    }
    return
  }
  func.func @transform_0(%arg0: i32, %arg1: i32) -> (i32, i32) {
    %c0_i32 = arith.constant 0 : i32
    %c0_i32_0 = arith.constant 0 : i32
    %c0_i32_1 = arith.constant 0 : i32
    return %c0_i32, %c0_i32_0 : i32, i32
  }
  func.func @transform_1(%arg0: i32, %arg1: i32) -> (i32, i32, i32) {
    %c0_i32 = arith.constant 0 : i32
    %c0_i32_0 = arith.constant 0 : i32
    return %arg0, %c0_i32, %arg1 : i32, i32, i32
  }
  func.func @transform_2(%arg0: i32, %arg1: i32) -> (i32, i32, i32) {
    %c0_i32 = arith.constant 0 : i32
    %c0_i32_0 = arith.constant 0 : i32
    return %arg0, %c0_i32, %arg1 : i32, i32, i32
  }
  func.func @transform_3(%arg0: i32, %arg1: i32) -> (i32, i32, i32) {
    %c0_i32 = arith.constant 0 : i32
    %c0_i32_0 = arith.constant 0 : i32
    return %arg0, %arg1, %c0_i32 : i32, i32, i32
  }
  func.func @transform_4(%arg0: i32, %arg1: i32) -> (i32, i32, i32) {
    %c0_i32 = arith.constant 0 : i32
    %c0_i32_0 = arith.constant 0 : i32
    %c0_i32_1 = arith.constant 0 : i32
    return %arg0, %c0_i32, %c0_i32_0 : i32, i32, i32
  }
  func.func @transform_5(%arg0: i32, %arg1: i32) -> (i32, i32, i32) {
    %c0_i32 = arith.constant 0 : i32
    %c0_i32_0 = arith.constant 0 : i32
    %c0_i32_1 = arith.constant 0 : i32
    return %arg0, %c0_i32, %c0_i32_0 : i32, i32, i32
  }
}

</mosaic_0001>

<bundles_post_ra>
// kernel: tpu_custom_call.1
= control target key start
LH: loop header
LB: loop body
LE: loop exit
PB: predicated region body
PF: predicated region fallthrough
CT: control target
= control target key end

     0   :  { %s5846_s0 = inlined_call_operand.hbm [shape: bf16[2,256], index: 0, kind: input, shape index: {}]   ;;  %s5847_s1 = inlined_call_operand.hbm [shape: bf16[2,256,2048], index: 1, kind: input, shape index: {}]   ;;  %s5848_s2 = inlined_call_operand.hbm [shape: f32[2,1,2048], index: 2, kind: input, shape index: {}]   ;;  %s5849_s3 = inlined_call_operand.hbm [shape: bf16[2,2048,128], index: 3, kind: input, shape index: {}]   ;;  %s5850_s4 = inlined_call_operand.hbm [shape: f32[2,1,128], index: 4, kind: input, shape index: {}]   ;;  %s5851_s5 = inlined_call_operand.hbm [shape: f32[2,2,128], index: 5, kind: output, shape index: {}]  }
   0x1   :  { %5866 = sst [smem:[#allocation21_spill]] %s5847_s1 }
   0x2   :  { %5867 = sst [smem:[#allocation22_spill]] %s5849_s3 }
   0x3   :  { %10 = vsyncpa [#allocation3], 0 }
   0x4   :  { %11 = vsyncpa [#allocation6], 0 }
   0x5   :  { %13 = vsyncpa [#allocation6 + $0x1], 0 }
   0x6   :  { %14 = vsyncpa [#allocation9], 0 }
   0x7   :  { %16 = vsyncpa [#allocation9 + $0x1], 0 }
   0x8   :  { %17 = vsyncpa [#allocation4], 0 }
   0x9   :  { %19 = vsyncpa [#allocation4 + $0x1], 0  ;;  %s5039_s18 = smov 0   ;;  %s5041_s19 = smov 0  }
   0xa   :  { %s5043_s20 = smov 0   ;;  %s5045_s21 = smov 0  }
   0xb   :  { %s5047_s22 = smov 0   ;;  %s5049_s23 = smov 0  }
   0xc LB: > { %5868 = sst [smem:[#allocation16_spill]] %s4985_s20  ;;  %s37_s24 = sadd.s32 1, %s4993_s22  ;;  %s4997_s23 = sphi %s5049_s23, %s25_s23   ;;  %s4993_s22 = sphi %s5047_s22, %s5901_s22   ;;  %s4989_s21 = sphi %s5045_s21, %s5900_s21   ;;  %s4985_s20 = sphi %s5043_s20, %s5896_s20   ;;  %s4981_s19 = sphi %s5041_s19, %s5899_s19   ;;  %s4977_s18 = sphi %s5039_s18, %s5898_s18  }
   0xd   : > { %5869 = sst [smem:[#allocation17_spill]] %s4997_s23  ;;  %s67_s25 = sadd.s32 1, %s4985_s20 }
   0xe   : > { %p39_p0 = scmp.ge.s32.totalorder %s37_s24, 2  ;;  %p5852_p1 = scmp.ne.s32.totalorder %s4985_s20, %s4981_s19 }
   0xf   : > { %p75_p2 = scmp.eq.s32.totalorder %s4997_s23, 0  ;;  %p4571_p5 = scmp.lt.s32.totalorder %s4997_s23, 2 }
  0x10   : > { %s5903_s24 = smov (%p39_p0, %s37_s24), 0  ;;  %s223_s27 = sand.u32 1, %s4997_s23  }
  0x11   : > { %5870 = sst [smem:[#allocation18_spill]] %s5903_s24  ;;  %p76_p4 = por %p75_p2, %p5852_p1 }
  0x12   : > { %s62_s26 = ssub.s32 %s4993_s22, %s5903_s24  ;;  %s5085_s28 = sand.u32 1, %s4985_s20  }
  0x13   : > { %p65_p6 = scmp.eq.s32.totalorder %s62_s26, 0  ;;  %s4356_s29 = sshll.u32 %s4993_s22, 15 }
  0x14   : > { %s3949_s6 = sshll.u32 %s5085_s28, 11  ;;  %s5872_s1 = sld [smem:[#allocation21_spill]] }
  0x15   : > { %s5089_s30 = scalar_select %p65_p6, %s4985_s20, %s67_s25  }
  0x16   : > { %p5097_p7 = pnand %p4571_p5, %p76_p4  ;;  %s227_s11 = scalar_lea.vmem [#allocation5], %s3949_s6 }
  0x17   : > { %5871 = sst [smem:[#allocation19_spill]] %s5089_s30  ;;  %s236_s12 = sshll.u32 %s227_s11, 4  ;;  %s5101_s12 = int_to_ptr.vmem [resolvable:$true] %s236_s12 }
  0x18   : > { %s5873_s10 = scalar_select %p5097_p7, 1, 0 }
  0x19   : > { %s5105_s13 = scalar_lea.sflag [#allocation6], %s223_s27  ;;  %p5111_p9 = pneg %p5097_p7 }
  0x1a   : > { %s5095_s9 = scalar_lea.hbm %s5872_s1, %s4356_s29  ;;  %s4764_s25 = scalar_lea.hbm %s5872_s1, 65536 }
  0x1b   : > { %s4759_s14 = scalar_lea.hbm %s5095_s9, 32768  ;;  %p4765_p12 = scmp.lt.u32.totalorder %s5095_s9, %s5872_s1 }
  0x1c   : > { %p4760_p8 = scmp.ne.s32.totalorder %s5095_s9, %s4759_s14  ;;  %p4766_p13 = scmp.lt.u32.totalorder %s4764_s25, %s4759_s14 }
  0x1d   : > { %s5874_s15 = scalar_select %p5111_p9, 1, 0 }
  0x1e   : > { %p4762_p10 = pnand %p5111_p9, %p4760_p8  ;;  %p4767_p0 = por %p4766_p13, %p4765_p12 }
  0x1f   : > { %p4768_p2 = scmp.lt.u32.totalorder %s4759_s14, %s5095_s9 }
  0x20   : > { %p4763_p11 = pneg %p4762_p10 }
  0x21   : > { %p4769_p4 = por %p4768_p2, %p4767_p0 }
  0x23   : > { %p4770_p5 = pnand %p4769_p4, %p4763_p11 }
  0x25   : > { %4773 = shalt.err (!%p4770_p5)
}
  0x26   : > { %s4774_s6 = scalar_lea.vmem %s5101_s12, 32768  ;;  %s4999_s7 = smov [#allocation5]  }
  0x27   : > { %p4775_p6 = scmp.ne.s32.totalorder %s5101_s12, %s4774_s6  ;;  %s4779_s8 = sshll.u32 %s4999_s7, 4  ;;  %s4780_s8 = int_to_ptr.vmem [resolvable:$false] %s4779_s8 }
  0x28   : > { %s4781_s11 = scalar_lea.vmem %s4780_s8, 65536  ;;  %p4782_p3 = scmp.lt.s32.totalorder %s5101_s12, %s4780_s8 }
  0x29   : > { %p4777_p8 = pnand %p4775_p6, %p5111_p9  ;;  %p4783_p1 = scmp.lt.s32.totalorder %s4781_s11, %s4774_s6 }
  0x2b   : > { %p4778_p10 = pneg %p4777_p8  ;;  %p4784_p12 = por %p4783_p1, %p4782_p3 }
  0x2d   : > { %p4785_p13 = pnand %p4784_p12, %p4778_p10 }
  0x2f   : > { %4788 = shalt.err (!%p4785_p13)
}
  0x30   : > { %s5000_s14 = smov 1024   ;;  %s5001_s16 = smov 64  }
  0x31   : > { %4556 = dma.hbm_to_vmem [thread:$0]  (!%p5097_p7), %s5095_s9, 32768, %s5101_s12, %s5105_s13, %s5000_s14, %s5000_s14, %s5001_s16  }
  0x32   : > { %s3955_s17 = sshll.u32 %s5085_s28, 10  ;;  %s4358_s25 = sshll.u32 %s4993_s22, 14 }
  0x33   : > { %s5875_s3 = sld [smem:[#allocation22_spill]]  ;;  %s271_s7 = scalar_lea.vmem [#allocation8], %s3955_s17 }
  0x34   : > { %s280_s8 = sshll.u32 %s271_s7, 4  ;;  %s5147_s11 = scalar_lea.sflag [#allocation9], %s223_s27  ;;  %s5143_s8 = int_to_ptr.vmem [resolvable:$true] %s280_s8 }
  0x39   : > { %s5141_s6 = scalar_lea.hbm %s5875_s3, %s4358_s25  ;;  %s4794_s14 = scalar_lea.hbm %s5875_s3, 32768 }
  0x3a   : > { %s4789_s1 = scalar_lea.hbm %s5141_s6, 16384  ;;  %p4795_p0 = scmp.lt.u32.totalorder %s5141_s6, %s5875_s3 }
  0x3b   : > { %p4790_p1 = scmp.ne.s32.totalorder %s5141_s6, %s4789_s1  ;;  %p4796_p2 = scmp.lt.u32.totalorder %s4794_s14, %s4789_s1 }
  0x3c   : > { %p4798_p5 = scmp.lt.u32.totalorder %s4789_s1, %s5141_s6 }
  0x3d   : > { %p4792_p3 = pnand %p4790_p1, %p5111_p9  ;;  %p4797_p4 = por %p4796_p2, %p4795_p0 }
  0x3f   : > { %p4793_p11 = pneg %p4792_p3  ;;  %p4799_p6 = por %p4798_p5, %p4797_p4 }
  0x41   : > { %p4800_p8 = pnand %p4799_p6, %p4793_p11 }
  0x43   : > { %4803 = shalt.err (!%p4800_p8)
}
  0x44   : > { %s4804_s27 = scalar_lea.vmem %s5143_s8, 16384  ;;  %s5002_s17 = smov [#allocation8]  }
  0x45   : > { %p4805_p10 = scmp.ne.s32.totalorder %s5143_s8, %s4804_s27  ;;  %s4809_s29 = sshll.u32 %s5002_s17, 4  ;;  %s4810_s29 = int_to_ptr.vmem [resolvable:$false] %s4809_s29 }
  0x46   : > { %s4811_s7 = scalar_lea.vmem %s4810_s29, 32768  ;;  %p4812_p1 = scmp.lt.s32.totalorder %s5143_s8, %s4810_s29 }
  0x47   : > { %p4807_p12 = pnand %p4805_p10, %p5111_p9  ;;  %p4813_p3 = scmp.lt.s32.totalorder %s4811_s7, %s4804_s27 }
  0x49   : > { %p4808_p13 = pneg %p4807_p12  ;;  %p4814_p0 = por %p4813_p3, %p4812_p1 }
  0x4b   : > { %p4815_p2 = pnand %p4814_p0, %p4808_p13 }
  0x4d   : > { %4818 = shalt.err (!%p4815_p2)
}
  0x4e   : > { %s5003_s1 = smov 4   ;;  %s5174_s9 = sadd.s32 4294967295, %s4997_s23  }
  0x4f   : > { %4562 = dma.hbm_to_vmem [thread:$0]  (!%p5097_p7), %s5141_s6, 16384, %s5143_s8, %s5147_s11, %s5001_s16, %s5001_s16, %s5003_s1  }
  0x50   : > { %s3945_s12 = sadd.s32 4294967294, %s4997_s23   ;;  %p80_p11 = scmp.ne.s32.totalorder %s4981_s19, %s4977_s18 }
  0x51   : > { %p5858_p4 = scmp.eq.s32.totalorder %s5174_s9, 0  ;;  %p186_p5 = scmp.eq.s32.totalorder %s5174_s9, 1 }
  0x52   : > { %p192_p6 = scmp.eq.s32.totalorder %s3945_s12, 1  ;;  %p3946_p8 = scmp.ge.s32.totalorder %s4997_s23, 1 }
  0x53   : > { %p5184_p10 = por %p5858_p4, %p80_p11  ;;  %p5877_p12 = scmp.ne.s32.totalorder %s4985_s20, %s4981_s19 }
  0x54   : > { %p5195_p1 = por %p192_p6, %p80_p11  ;;  %p199_p3 = scmp.lt.s32.totalorder %s4997_s23, 3 }
  0x55   : > { %s5876_s14 = scalar_select %p5184_p10, 1, 0 }
  0x56   : > { %p5191_p13 = por %p186_p5, %p5877_p12  ;;  %p5200_p0 = pnand %p3946_p8, %p199_p3 }
  0x57   : > { %s5879_s6 = scalar_select %p5195_p1, 1, 0 }
  0x58   : > { %s5878_s16 = scalar_select %p5191_p13, 1, 0 }
  0x59   : > { %5880 = sst [smem:[#allocation20_spill]] %s5879_s6  ;;  %s5004_s25 = smov [#allocation2]  }
  0x5a   : > { %s5881_s8 = scalar_select %p5200_p0, 1, 0 }
  0x5b   : > { %s212_s26 = sshll.u32 %s5004_s25, 4  ;;  %s3952_s27 = sshll.u32 %s5085_s28, 4  ;;  %s213_s26 = int_to_ptr.vmem [resolvable:$true] %s212_s26 }
  0x5c   : > { %p4549_p2 = pneg %p5200_p0  ;;  %s4357_s17 = sshll.u32 %s4993_s22, 8 }
  0x5d   : > { %s250_s29 = scalar_lea.vmem [#allocation7], %s3952_s27  ;;  %s5217_s24 = scalar_lea.hbm %s5848_s2, %s4357_s17 }
  0x5e   : > { %s260_s7 = sshll.u32 %s250_s29, 4  ;;  %p5210_p11 = pnand %p4549_p2, %p5858_p4  ;;  %s5219_s7 = int_to_ptr.vmem [resolvable:$true] %s260_s7 }
  0x5f   : > { %s3958_s25 = sshll.u32 %s4993_s22, 4  ;;  %s4819_s23 = scalar_lea.hbm %s5846_s0, 32 }
  0x60   : > { %p4820_p5 = scmp.ne.s32.totalorder %s5846_s0, %s4819_s23  ;;  %p4821_p6 = pneg %p5210_p11 }
  0x61   : > { %p4826_p3 = scmp.lt.u32.totalorder %s4819_s23, %s5846_s0 }
  0x62   : > { %p4822_p8 = pnand %p4821_p6, %p4820_p5 }
  0x64   : > { %p4823_p12 = pneg %p4822_p8 }
  0x66   : > { %p4828_p2 = pnand %p4826_p3, %p4823_p12 }
  0x68   : > { %4831 = shalt.err (!%p4828_p2)
}
  0x69   : > { %s4832_s17 = scalar_lea.vmem %s213_s26, 32  ;;  %p4840_p10 = scmp.lt.s32.totalorder %s213_s26, %s213_s26 }
  0x6a   : > { %p4833_p4 = scmp.ne.s32.totalorder %s213_s26, %s4832_s17  ;;  %p4841_p0 = scmp.lt.s32.totalorder %s4832_s17, %s4832_s17 }
  0x6c   : > { %p4835_p1 = pnand %p4833_p4, %p4821_p6  ;;  %p4842_p7 = por %p4841_p0, %p4840_p10 }
  0x6e   : > { %p4836_p13 = pneg %p4835_p1 }
  0x70   : > { %p4843_p9 = pnand %p4842_p7, %p4836_p13 }
  0x72   : > { %4846 = shalt.err (!%p4843_p9)
}
  0x73   : > { %4552 = dma.hbm_to_vmem [thread:$0]  (!%p5210_p11), %s5846_s0, 32, %s213_s26, [#allocation3]  }
  0x74   : > { %s4847_s23 = scalar_lea.hbm %s5217_s24, 256  ;;  %p5883_p4 = scmp.ne.s32.totalorder %s5874_s15, 0 }
  0x75   : > { %p4848_p5 = scmp.ne.s32.totalorder %s5217_s24, %s4847_s23  ;;  %s4852_s27 = scalar_lea.hbm %s5848_s2, 512 }
  0x76   : > { %p4853_p7 = scmp.lt.u32.totalorder %s5217_s24, %s5848_s2  ;;  %p4854_p9 = scmp.lt.u32.totalorder %s4852_s27, %s4847_s23 }
  0x77   : > { %p4850_p1 = pnand %p4848_p5, %p5883_p4  ;;  %p4856_p13 = scmp.lt.u32.totalorder %s4847_s23, %s5217_s24 }
  0x78   : > { %p4855_p10 = por %p4854_p9, %p4853_p7 }
  0x79   : > { %p4851_p6 = pneg %p4850_p1 }
  0x7a   : > { %p4857_p0 = por %p4856_p13, %p4855_p10 }
  0x7c   : > { %p4858_p8 = pnand %p4857_p0, %p4851_p6 }
  0x7e   : > { %4861 = shalt.err (!%p4858_p8)
}
  0x7f   : > { %s4862_s26 = scalar_lea.vmem %s5219_s7, 256  ;;  %s5005_s3 = smov [#allocation7]  }
  0x80   : > { %p4863_p11 = scmp.ne.s32.totalorder %s5219_s7, %s4862_s26  ;;  %s4867_s17 = sshll.u32 %s5005_s3, 4  ;;  %s4868_s17 = int_to_ptr.vmem [resolvable:$false] %s4867_s17 }
  0x81   : > { %s4869_s20 = scalar_lea.vmem %s4868_s17, 512  ;;  %p4870_p2 = scmp.lt.s32.totalorder %s5219_s7, %s4868_s17 }
  0x82   : > { %p4865_p12 = pnand %p4863_p11, %p5883_p4  ;;  %p4871_p5 = scmp.lt.s32.totalorder %s4869_s20, %s4862_s26 }
  0x84   : > { %p4866_p3 = pneg %p4865_p12  ;;  %p4872_p1 = por %p4871_p5, %p4870_p2 }
  0x86   : > { %p4873_p7 = pnand %p4872_p1, %p4866_p3 }
  0x88   : > { %4876 = shalt.err (!%p4873_p7)
}
  0x89   : > { %p5884_p6 = scmp.ne.s32.totalorder %s5873_s10, 0  ;;  %s5265_s6 = scalar_lea.hbm %s5850_s4, %s3958_s25 }
  0x8a   : > { %s293_s12 = scalar_lea.vmem [#allocation10], %s5085_s28  ;;  %s4877_s29 = scalar_lea.hbm %s5265_s6, 16 }
  0x8b   : > { %4559 = dma.hbm_to_vmem [thread:$0]  (!%p5884_p6), %s5217_s24, 256, %s5219_s7, %s5105_s13  }
  0x8c   : > { %s300_s27 = sshll.u32 %s293_s12, 4  ;;  %p4878_p9 = scmp.ne.s32.totalorder %s5265_s6, %s4877_s29  ;;  %s301_s27 = int_to_ptr.vmem [resolvable:$true] %s300_s27 }
  0x8d   : > { %s4882_s13 = scalar_lea.hbm %s5850_s4, 32  ;;  %p4883_p0 = scmp.lt.u32.totalorder %s5265_s6, %s5850_s4 }
  0x8e   : > { %p4880_p10 = pnand %p4878_p9, %p5883_p4  ;;  %p4884_p8 = scmp.lt.u32.totalorder %s4882_s13, %s4877_s29 }
  0x8f   : > { %p4886_p12 = scmp.lt.u32.totalorder %s4877_s29, %s5265_s6 }
  0x90   : > { %p4881_p13 = pneg %p4880_p10  ;;  %p4885_p11 = por %p4884_p8, %p4883_p0 }
  0x92   : > { %p4887_p3 = por %p4886_p12, %p4885_p11 }
  0x94   : > { %p4888_p2 = pnand %p4887_p3, %p4881_p13 }
  0x96   : > { %4891 = shalt.err (!%p4888_p2)
}
  0x97   : > { %s4892_s28 = scalar_lea.vmem %s301_s27, 16  ;;  %s5006_s25 = smov [#allocation10]  }
  0x98   : > { %p4893_p5 = scmp.ne.s32.totalorder %s301_s27, %s4892_s28  ;;  %s4897_s3 = sshll.u32 %s5006_s25, 4  ;;  %s4898_s3 = int_to_ptr.vmem [resolvable:$false] %s4897_s3 }
  0x99   : > { %s4899_s17 = scalar_lea.vmem %s4898_s3, 32  ;;  %p4900_p9 = scmp.lt.s32.totalorder %s301_s27, %s4898_s3 }
  0x9a   : > { %p4895_p1 = pnand %p4893_p5, %p5883_p4  ;;  %p4901_p10 = scmp.lt.s32.totalorder %s4899_s17, %s4892_s28 }
  0x9c   : > { %p4896_p7 = pneg %p4895_p1  ;;  %p4902_p6 = por %p4901_p10, %p4900_p9 }
  0x9e   : > { %p4903_p0 = pnand %p4902_p6, %p4896_p7 }
  0xa0   : > { %4906 = shalt.err (!%p4903_p0)
}
  0xa1   : > { %p5885_p8 = scmp.ne.s32.totalorder %s5873_s10, 0  ;;  %p5886_p13 = scmp.ne.s32.totalorder %s5881_s8, 0 }
  0xa2   : > { %p5887_p4 = scmp.eq.s32.totalorder (!%p5886_p13), %s5174_s9, 0 }
  0xa3   : > { %4565 = dma.hbm_to_vmem [thread:$0]  (!%p5885_p8), %s5265_s6, 16, %s301_s27, %s5147_s11  }
  0xa4   : > { %309 = sbr.rel (%p5886_p13) target bundleno = 930 (0x3a2), region = 40 }
  0xab   : > { %4960 = dma.done.wait (%p5887_p4), [#allocation3], 32   ;;  %p5888_p11 = pmov %p5887_p4 }
  0xac   : > { %s315_s15 = sand.u32 1, %s5174_s9   ;;  %s5294_s20 = sand.u32 1, %s4981_s19  }
  0xad   : > { %4962 = vsyncadd (%p5888_p11), [#allocation3], 4294967264  ;;  %s3961_s10 = sshll.u32 %s5294_s20, 11  ;;  %s316_s30 = scalar_lea.sflag [#allocation6], %s315_s15 }
  0xae   : > { %s5297_s23 = scalar_lea.vmem [#allocation5], %s3961_s10  ;;  %p5889_p6 = scmp.ne.s32.totalorder %s5876_s14, 0 }
  0xb0   : > { %4964 = dma.done.wait (%p5889_p6), %s316_s30, 33024  }
  0xb1   : > { %4966 = vsyncadd (%p5889_p6), %s316_s30, 4294934272  ;;  %s3962_s11 = sshll.u32 %s5294_s20, 4  ;;  %s3963_s8 = sshll.u32 %s5294_s20, 10 }
  0xb2   : > { %s5305_s6 = scalar_lea.vmem [#allocation7], %s3962_s11  ;;  %s334_s9 = scalar_lea.sflag [#allocation9], %s315_s15 }
  0xb3   : > { %s5307_s12 = scalar_lea.vmem [#allocation8], %s3963_s8 }
  0xb4   : > { %4968 = dma.done.wait (%p5889_p6), %s334_s9, 16400  }
  0xb5   : > { %4970 = vsyncadd (%p5889_p6), %s334_s9, 4294950896  ;;  %v391_v0 = vld [vmem:[%s5297_s23] sm:$0xff]  ;;  %v392_v2 = vld [vmem:[%s5297_s23 + $0x8] sm:$0xff]  ;;  %v651_v35 = vlaneseq  ;;  %v5007_v36 = vmov 1966171168   ;;  %s3964_s14 = sshll.u32 %s5294_s20, 1 }
  0xb6   : > { %v399_v1 = vld [vmem:[%s5297_s23 + $0x40] sm:$0xff]  ;;  %v400_v4 = vld [vmem:[%s5297_s23 + $0x48] sm:$0xff]  ;;  %v741_v37 = vunpack.c.l.s4 %v5007_v36  ;;  %v5346_v59 = vld.sshfl [vmem:[#allocation2] sm:$0x11 pattern:$0x75316420] }
  0xb7   : > { %v3967_v3 = vcombine.high %v391_v0, %v399_v1  ;;  %v3966_v5 = vcombine.low %v391_v0, %v399_v1  ;;  %v407_v6 = vld [vmem:[%s5297_s23 + $0x80] sm:$0xff]  ;;  %v3969_v8 = vcombine.high %v392_v2, %v400_v4  ;;  %v3968_v9 = vcombine.low %v392_v2, %v400_v4  ;;  %v408_v11 = vld [vmem:[%s5297_s23 + $0x88] sm:$0xff]  ;;  %s385_s27 = scalar_lea.vmem [#allocation11], %s3964_s14  ;;  %s345_s29 = scalar_lea.vmem [#allocation10], %s5294_s20 }
  0xb8   : > { %v415_v7 = vld [vmem:[%s5297_s23 + $0xc0] sm:$0xff]  ;;  %v416_v12 = vld [vmem:[%s5297_s23 + $0xc8] sm:$0xff]  ;;  %v5337_v46 = vshrl.u32 %v651_v35, 7  ;;  %v742_v47 = vunpack.c.0.s8 %v741_v37  ;;  %v739_v63 = vcombine.high %v5346_v59, %v5346_v59  ;;  %s4353_s1 = sshll.u32 %s4989_s21, 5  ;;  %s3785_s24 = sshll.u32 %s385_s27, 4  ;;  %s5799_s24 = int_to_ptr.vmem [resolvable:$true] %s3785_s24 }
  0xb9   : > { %v3983_v10 = vcombine.high %v407_v6, %v415_v7  ;;  %v423_v13 = vld [vmem:[%s5297_s23 + $0x100] sm:$0xff]  ;;  %2036 = vmatprep.subr.bf16.mxu0 %v3967_v3  ;;  %v3985_v14 = vcombine.high %v408_v11, %v416_v12  ;;  %v424_v16 = vld [vmem:[%s5297_s23 + $0x108] sm:$0xff]  ;;  %2077 = vmatprep.subr.bf16.mxu1 %v3969_v8  ;;  %v3982_v18 = vcombine.low %v407_v6, %v415_v7  ;;  %s5797_s26 = scalar_lea.hbm %s5851_s5, %s4353_s1  ;;  %s3772_s28 = scalar_lea.sflag [#allocation4], %s5294_s20 }
  0xba   : > { %v431_v15 = vld [vmem:[%s5297_s23 + $0x140] sm:$0xff]  ;;  %v432_v17 = vld [vmem:[%s5297_s23 + $0x148] sm:$0xff]  ;;  %2037 = vmatpush1.bf16.msra.mxu0 %v3966_v5  ;;  %2078 = vmatpush1.bf16.msra.mxu1 %v3968_v9  ;;  %v3984_v19 = vcombine.low %v408_v11, %v416_v12  ;;  %v5344_v56 = vsub.s32 %v742_v47, %v5337_v46  ;;  %s4907_s25 = scalar_lea.vmem %s5799_s24, 32  ;;  %p5890_p3 = scmp.ne.s32.totalorder %s5878_s16, 0 }
  0xbb   : > { %2038 = vmatprep.subr.bf16.mxu0 %v3983_v10  ;;  %v3999_v20 = vcombine.high %v423_v13, %v431_v15  ;;  %2079 = vmatprep.subr.bf16.mxu1 %v3985_v14  ;;  %v4001_v21 = vcombine.high %v424_v16, %v432_v17  ;;  %v439_v22 = vld [vmem:[%s5297_s23 + $0x180] sm:$0xff]  ;;  %v440_v24 = vld [vmem:[%s5297_s23 + $0x188] sm:$0xff]  ;;  %v3998_v26 = vcombine.low %v423_v13, %v431_v15  ;;  %p4908_p12 = scmp.ne.s32.totalorder %s5799_s24, %s4907_s25  ;;  %s5008_s21 = smov [#allocation11]  }
  0xbc   : > { %v447_v23 = vld [vmem:[%s5297_s23 + $0x1c0] sm:$0xff]  ;;  %v448_v25 = vld [vmem:[%s5297_s23 + $0x1c8] sm:$0xff]  ;;  %v4000_v27 = vcombine.low %v424_v16, %v432_v17  ;;  %v5355_v3 = vrot.slane %v739_v63, %v5344_v56  ;;  %s4911_s3 = sshll.u32 %s5008_s21, 4  ;;  %s4912_s3 = int_to_ptr.vmem [resolvable:$false] %s4911_s3 }
  0xbd   : > { %v4015_v28 = vcombine.high %v439_v22, %v447_v23  ;;  %v4017_v29 = vcombine.high %v440_v24, %v448_v25  ;;  %v455_v30 = vld [vmem:[%s5297_s23 + $0x200] sm:$0xff]  ;;  %v456_v32 = vld [vmem:[%s5297_s23 + $0x208] sm:$0xff]  ;;  %v4014_v34 = vcombine.low %v439_v22, %v447_v23  ;;  %v4016_v38 = vcombine.low %v440_v24, %v448_v25  ;;  %p4909_p2 = pnand %p4908_p12, %p5890_p3  ;;  %s4913_s17 = scalar_lea.vmem %s4912_s3, 64 }
  0xbe   : > { %2039 = vmatpush1.bf16.msra.mxu0 %v3982_v18  ;;  %2080 = vmatpush1.bf16.msra.mxu1 %v3984_v19  ;;  %v463_v31 = vld [vmem:[%s5297_s23 + $0x240] sm:$0xff]  ;;  %v464_v33 = vld [vmem:[%s5297_s23 + $0x248] sm:$0xff]  ;;  %p4914_p1 = scmp.lt.s32.totalorder %s5799_s24, %s4912_s3  ;;  %p4915_p7 = scmp.lt.s32.totalorder %s4913_s17, %s4907_s25 }
  0xbf   : > { %2040 = vmatprep.subr.bf16.mxu0 %v3999_v20  ;;  %2081 = vmatprep.subr.bf16.mxu1 %v4001_v21  ;;  %v4031_v39 = vcombine.high %v455_v30, %v463_v31  ;;  %v4033_v40 = vcombine.high %v456_v32, %v464_v33  ;;  %v471_v41 = vld [vmem:[%s5297_s23 + $0x280] sm:$0xff]  ;;  %v472_v43 = vld [vmem:[%s5297_s23 + $0x288] sm:$0xff]  ;;  %v4030_v45 = vcombine.low %v455_v30, %v463_v31  ;;  %p4910_p5 = pneg %p4909_p2 }
  0xc0   : > { %v479_v42 = vld [vmem:[%s5297_s23 + $0x2c0] sm:$0xff]  ;;  %v480_v44 = vld [vmem:[%s5297_s23 + $0x2c8] sm:$0xff]  ;;  %v4032_v48 = vcombine.low %v456_v32, %v464_v33  ;;  %2068 = vmatprep.mubr.bf16.mxu0 %v5355_v3  ;;  %2109 = vmatprep.mubr.bf16.mxu1 %v5355_v3  ;;  %p4916_p9 = por %p4915_p7, %p4914_p1 }
  0xc1   : > { %v4047_v49 = vcombine.high %v471_v41, %v479_v42  ;;  %v4049_v50 = vcombine.high %v472_v43, %v480_v44  ;;  %v487_v51 = vld [vmem:[%s5297_s23 + $0x300] sm:$0xff]  ;;  %v488_v53 = vld [vmem:[%s5297_s23 + $0x308] sm:$0xff]  ;;  %v4046_v55 = vcombine.low %v471_v41, %v479_v42  ;;  %v4048_v57 = vcombine.low %v472_v43, %v480_v44 }
  0xc2   : > { %2041 = vmatpush1.bf16.msra.mxu0 %v3998_v26  ;;  %2082 = vmatpush1.bf16.msra.mxu1 %v4000_v27  ;;  %v495_v52 = vld [vmem:[%s5297_s23 + $0x340] sm:$0xff]  ;;  %v496_v54 = vld [vmem:[%s5297_s23 + $0x348] sm:$0xff]  ;;  %p4917_p10 = pnand %p4916_p9, %p4910_p5 }
  0xc3   : > { %2042 = vmatprep.subr.bf16.mxu0 %v4015_v28  ;;  %2083 = vmatprep.subr.bf16.mxu1 %v4017_v29  ;;  %v4063_v58 = vcombine.high %v487_v51, %v495_v52  ;;  %v4065_v60 = vcombine.high %v488_v53, %v496_v54  ;;  %v503_v61 = vld [vmem:[%s5297_s23 + $0x380] sm:$0xff]  ;;  %v504_v0 = vld [vmem:[%s5297_s23 + $0x388] sm:$0xff]  ;;  %v4062_v2 = vcombine.low %v487_v51, %v495_v52 }
  0xc4   : > { %v511_v62 = vld [vmem:[%s5297_s23 + $0x3c0] sm:$0xff]  ;;  %v512_v1 = vld [vmem:[%s5297_s23 + $0x3c8] sm:$0xff]  ;;  %v4064_v4 = vcombine.low %v488_v53, %v496_v54 }
  0xc5   : > { %v4079_v5 = vcombine.high %v503_v61, %v511_v62  ;;  %v4081_v6 = vcombine.high %v504_v0, %v512_v1  ;;  %v519_v7 = vld [vmem:[%s5297_s23 + $0x400] sm:$0xff]  ;;  %v520_v9 = vld [vmem:[%s5297_s23 + $0x408] sm:$0xff]  ;;  %v4078_v11 = vcombine.low %v503_v61, %v511_v62  ;;  %v4080_v12 = vcombine.low %v504_v0, %v512_v1 }
  0xc6   : > { %2043 = vmatpush1.bf16.msra.mxu0 %v4014_v34  ;;  %2084 = vmatpush1.bf16.msra.mxu1 %v4016_v38  ;;  %v527_v8 = vld [vmem:[%s5297_s23 + $0x440] sm:$0xff]  ;;  %v528_v10 = vld [vmem:[%s5297_s23 + $0x448] sm:$0xff] }
  0xc7   : > { %2044 = vmatprep.subr.bf16.mxu0 %v4031_v39  ;;  %2085 = vmatprep.subr.bf16.mxu1 %v4033_v40  ;;  %v4095_v13 = vcombine.high %v519_v7, %v527_v8  ;;  %v4097_v14 = vcombine.high %v520_v9, %v528_v10  ;;  %v535_v15 = vld [vmem:[%s5297_s23 + $0x480] sm:$0xff]  ;;  %v536_v17 = vld [vmem:[%s5297_s23 + $0x488] sm:$0xff]  ;;  %v4094_v19 = vcombine.low %v519_v7, %v527_v8 }
  0xc8   : > { %v543_v16 = vld [vmem:[%s5297_s23 + $0x4c0] sm:$0xff]  ;;  %v544_v18 = vld [vmem:[%s5297_s23 + $0x4c8] sm:$0xff]  ;;  %v4096_v20 = vcombine.low %v520_v9, %v528_v10 }
  0xc9   : > { %v4111_v21 = vcombine.high %v535_v15, %v543_v16  ;;  %v4113_v22 = vcombine.high %v536_v17, %v544_v18  ;;  %v551_v23 = vld [vmem:[%s5297_s23 + $0x500] sm:$0xff]  ;;  %v552_v25 = vld [vmem:[%s5297_s23 + $0x508] sm:$0xff]  ;;  %v4110_v27 = vcombine.low %v535_v15, %v543_v16  ;;  %v4112_v28 = vcombine.low %v536_v17, %v544_v18 }
  0xca   : > { %2045 = vmatpush1.bf16.msra.mxu0 %v4030_v45  ;;  %2086 = vmatpush1.bf16.msra.mxu1 %v4032_v48  ;;  %v559_v24 = vld [vmem:[%s5297_s23 + $0x540] sm:$0xff]  ;;  %v560_v26 = vld [vmem:[%s5297_s23 + $0x548] sm:$0xff] }
  0xcb   : > { %2046 = vmatprep.subr.bf16.mxu0 %v4047_v49  ;;  %2087 = vmatprep.subr.bf16.mxu1 %v4049_v50  ;;  %v4127_v29 = vcombine.high %v551_v23, %v559_v24  ;;  %v4129_v30 = vcombine.high %v552_v25, %v560_v26  ;;  %v567_v31 = vld [vmem:[%s5297_s23 + $0x580] sm:$0xff]  ;;  %v568_v33 = vld [vmem:[%s5297_s23 + $0x588] sm:$0xff]  ;;  %v4126_v35 = vcombine.low %v551_v23, %v559_v24  ;;  %v418_v23 = vld [vmem:[%s5297_s23 + $0xd8] sm:$0xff] }
  0xcc   : > { %v575_v32 = vld [vmem:[%s5297_s23 + $0x5c0] sm:$0xff]  ;;  %v576_v34 = vld [vmem:[%s5297_s23 + $0x5c8] sm:$0xff]  ;;  %v4128_v36 = vcombine.low %v552_v25, %v560_v26 }
  0xcd   : > { %v4143_v37 = vcombine.high %v567_v31, %v575_v32  ;;  %v4145_v38 = vcombine.high %v568_v33, %v576_v34  ;;  %v583_v39 = vld [vmem:[%s5297_s23 + $0x600] sm:$0xff]  ;;  %v584_v41 = vld [vmem:[%s5297_s23 + $0x608] sm:$0xff]  ;;  %v4142_v43 = vcombine.low %v567_v31, %v575_v32  ;;  %v4144_v44 = vcombine.low %v568_v33, %v576_v34  ;;  %v434_v31 = vld [vmem:[%s5297_s23 + $0x158] sm:$0xff] }
  0xce   : > { %2047 = vmatpush1.bf16.msra.mxu0 %v4046_v55  ;;  %2088 = vmatpush1.bf16.msra.mxu1 %v4048_v57  ;;  %v591_v40 = vld [vmem:[%s5297_s23 + $0x640] sm:$0xff]  ;;  %v592_v42 = vld [vmem:[%s5297_s23 + $0x648] sm:$0xff]  ;;  %v441_v33 = vld [vmem:[%s5297_s23 + $0x190] sm:$0xff] }
  0xcf   : > { %2048 = vmatprep.subr.bf16.mxu0 %v4063_v58  ;;  %2089 = vmatprep.subr.bf16.mxu1 %v4065_v60  ;;  %v4159_v45 = vcombine.high %v583_v39, %v591_v40  ;;  %v4161_v47 = vcombine.high %v584_v41, %v592_v42  ;;  %v599_v48 = vld [vmem:[%s5297_s23 + $0x680] sm:$0xff]  ;;  %v600_v50 = vld [vmem:[%s5297_s23 + $0x688] sm:$0xff]  ;;  %v4158_v52 = vcombine.low %v583_v39, %v591_v40  ;;  %v449_v34 = vld [vmem:[%s5297_s23 + $0x1d0] sm:$0xff] }
  0xd0   : > { %v607_v49 = vld [vmem:[%s5297_s23 + $0x6c0] sm:$0xff]  ;;  %v608_v51 = vld [vmem:[%s5297_s23 + $0x6c8] sm:$0xff]  ;;  %v4160_v53 = vcombine.low %v584_v41, %v592_v42  ;;  %v4019_v40 = vcombine.high %v441_v33, %v449_v34  ;;  %v457_v41 = vld [vmem:[%s5297_s23 + $0x210] sm:$0xff] }
  0xd1   : > { %v4175_v54 = vcombine.high %v599_v48, %v607_v49  ;;  %v4177_v55 = vcombine.high %v600_v50, %v608_v51  ;;  %v615_v57 = vld [vmem:[%s5297_s23 + $0x700] sm:$0xff]  ;;  %v616_v60 = vld [vmem:[%s5297_s23 + $0x708] sm:$0xff]  ;;  %v4174_v62 = vcombine.low %v599_v48, %v607_v49  ;;  %v4176_v63 = vcombine.low %v600_v50, %v608_v51  ;;  %v465_v42 = vld [vmem:[%s5297_s23 + $0x250] sm:$0xff] }
  0xd2   : > { %2049 = vmatpush1.bf16.msra.mxu0 %v4062_v2  ;;  %2090 = vmatpush1.bf16.msra.mxu1 %v4064_v4  ;;  %v623_v58 = vld [vmem:[%s5297_s23 + $0x740] sm:$0xff]  ;;  %v624_v61 = vld [vmem:[%s5297_s23 + $0x748] sm:$0xff]  ;;  %v4035_v49 = vcombine.high %v457_v41, %v465_v42  ;;  %v473_v50 = vld [vmem:[%s5297_s23 + $0x290] sm:$0xff] }
  0xd3   : > { %2050 = vmatprep.subr.bf16.mxu0 %v4079_v5  ;;  %2091 = vmatprep.subr.bf16.mxu1 %v4081_v6  ;;  %v4191_v0 = vcombine.high %v615_v57, %v623_v58  ;;  %v4193_v1 = vcombine.high %v616_v60, %v624_v61  ;;  %v631_v2 = vld [vmem:[%s5297_s23 + $0x780] sm:$0xff]  ;;  %v632_v5 = vld [vmem:[%s5297_s23 + $0x788] sm:$0xff]  ;;  %v4190_v7 = vcombine.low %v615_v57, %v623_v58  ;;  %v481_v51 = vld [vmem:[%s5297_s23 + $0x2d0] sm:$0xff] }
  0xd4   : > { %v639_v4 = vld [vmem:[%s5297_s23 + $0x7c0] sm:$0xff]  ;;  %v640_v6 = vld [vmem:[%s5297_s23 + $0x7c8] sm:$0xff]  ;;  %v4192_v8 = vcombine.low %v616_v60, %v624_v61  ;;  %v4051_v58 = vcombine.high %v473_v50, %v481_v51  ;;  %v489_v60 = vld [vmem:[%s5297_s23 + $0x310] sm:$0xff] }
  0xd5   : > { %v4207_v9 = vcombine.high %v631_v2, %v639_v4  ;;  %v4209_v10 = vcombine.high %v632_v5, %v640_v6  ;;  %v4206_v15 = vcombine.low %v631_v2, %v639_v4  ;;  %v4208_v16 = vcombine.low %v632_v5, %v640_v6  ;;  %v497_v61 = vld [vmem:[%s5297_s23 + $0x350] sm:$0xff] }
  0xd6   : > { %2051 = vmatpush1.bf16.msra.mxu0 %v4078_v11  ;;  %2092 = vmatpush1.bf16.msra.mxu1 %v4080_v12  ;;  %v393_v11 = vld [vmem:[%s5297_s23 + $0x10] sm:$0xff]  ;;  %v4067_v4 = vcombine.high %v489_v60, %v497_v61 }
  0xd7   : > { %2052 = vmatprep.subr.bf16.mxu0 %v4095_v13  ;;  %2093 = vmatprep.subr.bf16.mxu1 %v4097_v14  ;;  %v401_v12 = vld [vmem:[%s5297_s23 + $0x50] sm:$0xff]  ;;  %v394_v13 = vld [vmem:[%s5297_s23 + $0x18] sm:$0xff] }
  0xd8   : > { %v402_v14 = vld [vmem:[%s5297_s23 + $0x58] sm:$0xff]  ;;  %v3971_v17 = vcombine.high %v393_v11, %v401_v12  ;;  %v3970_v24 = vcombine.low %v393_v11, %v401_v12  ;;  %v505_v5 = vld [vmem:[%s5297_s23 + $0x390] sm:$0xff] }
  0xd9   : > { %v3973_v18 = vcombine.high %v394_v13, %v402_v14  ;;  %v3972_v25 = vcombine.low %v394_v13, %v402_v14  ;;  %v513_v6 = vld [vmem:[%s5297_s23 + $0x3d0] sm:$0xff] }
  0xda   : > { %2053 = vmatpush1.bf16.msra.mxu0 %v4094_v19  ;;  %2094 = vmatpush1.bf16.msra.mxu1 %v4096_v20  ;;  %v409_v19 = vld [vmem:[%s5297_s23 + $0x90] sm:$0xff]  ;;  %v4083_v12 = vcombine.high %v505_v5, %v513_v6 }
  0xdb   : > { %2054 = vmatprep.subr.bf16.mxu0 %v4111_v21  ;;  %2095 = vmatprep.subr.bf16.mxu1 %v4113_v22  ;;  %v417_v20 = vld [vmem:[%s5297_s23 + $0xd0] sm:$0xff]  ;;  %v5399_v21 = vrot.slane %v5346_v59, %v5344_v56  ;;  %v410_v22 = vld [vmem:[%s5297_s23 + $0x98] sm:$0xff] }
  0xdc   : > { %v3987_v26 = vcombine.high %v409_v19, %v417_v20  ;;  %v3986_v56 = vcombine.low %v409_v19, %v417_v20  ;;  %v3988_v59 = vcombine.low %v410_v22, %v418_v23  ;;  %v521_v13 = vld [vmem:[%s5297_s23 + $0x410] sm:$0xff] }
  0xdd   : > { %v529_v14 = vld [vmem:[%s5297_s23 + $0x450] sm:$0xff] }
  0xde   : > { %2055 = vmatpush1.bf16.msra.mxu0 %v4110_v27  ;;  %2096 = vmatpush1.bf16.msra.mxu1 %v4112_v28  ;;  %v425_v27 = vld [vmem:[%s5297_s23 + $0x110] sm:$0xff]  ;;  %v4099_v20 = vcombine.high %v521_v13, %v529_v14 }
  0xdf   : > { %2056 = vmatprep.subr.bf16.mxu0 %v4127_v29  ;;  %2097 = vmatprep.subr.bf16.mxu1 %v4129_v30  ;;  %v433_v28 = vld [vmem:[%s5297_s23 + $0x150] sm:$0xff]  ;;  %v426_v29 = vld [vmem:[%s5297_s23 + $0x118] sm:$0xff]  ;;  %v3989_v30 = vcombine.high %v410_v22, %v418_v23 }
  0xe0   : > { %v4003_v32 = vcombine.high %v425_v27, %v433_v28  ;;  %v4004_v39 = vcombine.low %v426_v29, %v434_v31  ;;  %v537_v22 = vld [vmem:[%s5297_s23 + $0x490] sm:$0xff] }
  0xe1   : > { %v545_v23 = vld [vmem:[%s5297_s23 + $0x4d0] sm:$0xff] }
  0xe2   : > { %2057 = vmatpush1.bf16.msra.mxu0 %v4126_v35  ;;  %2098 = vmatpush1.bf16.msra.mxu1 %v4128_v36  ;;  %v442_v35 = vld [vmem:[%s5297_s23 + $0x198] sm:$0xff]  ;;  %v4005_v36 = vcombine.high %v426_v29, %v434_v31  ;;  %v4115_v29 = vcombine.high %v537_v22, %v545_v23  ;;  %v561_v31 = vld [vmem:[%s5297_s23 + $0x550] sm:$0xff] }
  0xe3   : > { %2058 = vmatprep.subr.bf16.mxu0 %v4143_v37  ;;  %2099 = vmatprep.subr.bf16.mxu1 %v4145_v38  ;;  %v450_v37 = vld [vmem:[%s5297_s23 + $0x1d8] sm:$0xff]  ;;  %v4002_v38 = vcombine.low %v425_v27, %v433_v28  ;;  %v4098_v27 = vcombine.low %v521_v13, %v529_v14 }
  0xe4   : > { %v4020_v48 = vcombine.low %v442_v35, %v450_v37 }
  0xe6   : > { %2059 = vmatpush1.bf16.msra.mxu0 %v4142_v43  ;;  %2100 = vmatpush1.bf16.msra.mxu1 %v4144_v44  ;;  %v458_v43 = vld [vmem:[%s5297_s23 + $0x218] sm:$0xff]  ;;  %v4021_v44 = vcombine.high %v442_v35, %v450_v37  ;;  %v577_v37 = vld [vmem:[%s5297_s23 + $0x5d0] sm:$0xff] }
  0xe7   : > { %2060 = vmatprep.subr.bf16.mxu0 %v4159_v45  ;;  %2101 = vmatprep.subr.bf16.mxu1 %v4161_v47  ;;  %v466_v45 = vld [vmem:[%s5297_s23 + $0x258] sm:$0xff]  ;;  %v4018_v47 = vcombine.low %v441_v33, %v449_v34  ;;  %v4114_v33 = vcombine.low %v537_v22, %v545_v23 }
  0xe8   : > { %v4036_v57 = vcombine.low %v458_v43, %v466_v45 }
  0xea   : > { %2061 = vmatpush1.bf16.msra.mxu0 %v4158_v52  ;;  %2102 = vmatpush1.bf16.msra.mxu1 %v4160_v53  ;;  %v474_v52 = vld [vmem:[%s5297_s23 + $0x298] sm:$0xff]  ;;  %v4037_v53 = vcombine.high %v458_v43, %v466_v45  ;;  %v593_v45 = vld [vmem:[%s5297_s23 + $0x650] sm:$0xff] }
  0xeb   : > { %2062 = vmatprep.subr.bf16.mxu0 %v4175_v54  ;;  %2103 = vmatprep.subr.bf16.mxu1 %v4177_v55  ;;  %v482_v54 = vld [vmem:[%s5297_s23 + $0x2d8] sm:$0xff]  ;;  %v4034_v55 = vcombine.low %v457_v41, %v465_v42 }
  0xec   : > { %v4052_v2 = vcombine.low %v474_v52, %v482_v54 }
  0xee   : > { %2063 = vmatpush1.bf16.msra.mxu0 %v4174_v62  ;;  %2104 = vmatpush1.bf16.msra.mxu1 %v4176_v63  ;;  %v490_v62 = vld [vmem:[%s5297_s23 + $0x318] sm:$0xff]  ;;  %v4053_v63 = vcombine.high %v474_v52, %v482_v54  ;;  %v609_v54 = vld [vmem:[%s5297_s23 + $0x6d0] sm:$0xff] }
  0xef   : > { %2064 = vmatprep.subr.bf16.mxu0 %v4191_v0  ;;  %2105 = vmatprep.subr.bf16.mxu1 %v4193_v1  ;;  %v498_v0 = vld [vmem:[%s5297_s23 + $0x358] sm:$0xff]  ;;  %v4050_v1 = vcombine.low %v473_v50, %v481_v51 }
  0xf0   : > { %v4068_v11 = vcombine.low %v490_v62, %v498_v0 }
  0xf2   : > { %2065 = vmatpush1.bf16.msra.mxu0 %v4190_v7  ;;  %2106 = vmatpush1.bf16.msra.mxu1 %v4192_v8  ;;  %v506_v7 = vld [vmem:[%s5297_s23 + $0x398] sm:$0xff]  ;;  %v4069_v8 = vcombine.high %v490_v62, %v498_v0  ;;  %v625_v0 = vld [vmem:[%s5297_s23 + $0x750] sm:$0xff] }
  0xf3   : > { %2066 = vmatprep.subr.bf16.mxu0 %v4207_v9  ;;  %2107 = vmatprep.subr.bf16.mxu1 %v4209_v10  ;;  %v514_v9 = vld [vmem:[%s5297_s23 + $0x3d8] sm:$0xff]  ;;  %v4066_v10 = vcombine.low %v489_v60, %v497_v61 }
  0xf4   : > { %v4084_v19 = vcombine.low %v506_v7, %v514_v9 }
  0xf6   : > { %2067 = vmatpush1.bf16.msra.mxu0 %v4206_v15  ;;  %2108 = vmatpush1.bf16.msra.mxu1 %v4208_v16  ;;  %v522_v15 = vld [vmem:[%s5297_s23 + $0x418] sm:$0xff]  ;;  %v4085_v16 = vcombine.high %v506_v7, %v514_v9  ;;  %v641_v9 = vld [vmem:[%s5297_s23 + $0x7d0] sm:$0xff] }
  0xf7   : > { %2118 = vmatprep.subr.bf16.mxu0 %v3971_v17  ;;  %2159 = vmatprep.subr.bf16.mxu1 %v3973_v18  ;;  %v530_v17 = vld [vmem:[%s5297_s23 + $0x458] sm:$0xff]  ;;  %v4082_v18 = vcombine.low %v505_v5, %v513_v6 }
  0xf8   : > { %v4100_v28 = vcombine.low %v522_v15, %v530_v17 }
  0xf9   : > { %2069 = vmatmul.mubr.bf16.vlgmr.msra.gmra.mrb[0].mxu0 %v5399_v21  ;;  %2110 = vmatmul.mubr.bf16.vlgmr.msra.gmra.mrb[0].mxu1 %v5399_v21 }
  0xfa   : > { %2119 = vmatpush1.bf16.msra.mxu0 %v3970_v24  ;;  %2160 = vmatpush1.bf16.msra.mxu1 %v3972_v25  ;;  %v538_v24 = vld [vmem:[%s5297_s23 + $0x498] sm:$0xff]  ;;  %v4101_v25 = vcombine.high %v522_v15, %v530_v17  ;;  %v403_v17 = vld [vmem:[%s5297_s23 + $0x60] sm:$0xff] }
  0xfb   : > { %2120 = vmatprep.subr.bf16.mxu0 %v3987_v26  ;;  %2161 = vmatprep.subr.bf16.mxu1 %v3989_v30  ;;  %v546_v26 = vld [vmem:[%s5297_s23 + $0x4d8] sm:$0xff]  ;;  %v553_v30 = vld [vmem:[%s5297_s23 + $0x510] sm:$0xff] }
  0xfc   : > { %2150 = vmatprep.mubr.bf16.mxu0 %v5355_v3  ;;  %2191 = vmatprep.mubr.bf16.mxu1 %v5355_v3  ;;  %v4116_v34 = vcombine.low %v538_v24, %v546_v26  ;;  %v4131_v35 = vcombine.high %v553_v30, %v561_v31  ;;  %v4130_v41 = vcombine.low %v553_v30, %v561_v31 }
  0xfe   : > { %2121 = vmatpush1.bf16.msra.mxu0 %v3986_v56  ;;  %2162 = vmatpush1.bf16.msra.mxu1 %v3988_v59  ;;  %v554_v56 = vld [vmem:[%s5297_s23 + $0x518] sm:$0xff]  ;;  %v4117_v59 = vcombine.high %v538_v24, %v546_v26  ;;  %v419_v26 = vld [vmem:[%s5297_s23 + $0xe0] sm:$0xff] }
  0xff   : > { %2122 = vmatprep.subr.bf16.mxu0 %v4003_v32  ;;  %2163 = vmatprep.subr.bf16.mxu1 %v4005_v36  ;;  %v562_v32 = vld [vmem:[%s5297_s23 + $0x558] sm:$0xff]  ;;  %v569_v36 = vld [vmem:[%s5297_s23 + $0x590] sm:$0xff] }
 0x100   : > { %v4132_v42 = vcombine.low %v554_v56, %v562_v32  ;;  %v4147_v43 = vcombine.high %v569_v36, %v577_v37  ;;  %v4146_v50 = vcombine.low %v569_v36, %v577_v37 }
 0x102   : > { %2123 = vmatpush1.bf16.msra.mxu0 %v4002_v38  ;;  %2164 = vmatpush1.bf16.msra.mxu1 %v4004_v39  ;;  %v570_v38 = vld [vmem:[%s5297_s23 + $0x598] sm:$0xff]  ;;  %v4133_v39 = vcombine.high %v554_v56, %v562_v32  ;;  %v427_v32 = vld [vmem:[%s5297_s23 + $0x120] sm:$0xff] }
 0x103   : > { %2124 = vmatprep.subr.bf16.mxu0 %v4019_v40  ;;  %2165 = vmatprep.subr.bf16.mxu1 %v4021_v44  ;;  %v578_v40 = vld [vmem:[%s5297_s23 + $0x5d8] sm:$0xff]  ;;  %v585_v44 = vld [vmem:[%s5297_s23 + $0x610] sm:$0xff] }
 0x104   : > { %v4148_v51 = vcombine.low %v570_v38, %v578_v40  ;;  %v4163_v52 = vcombine.high %v585_v44, %v593_v45  ;;  %v4162_v60 = vcombine.low %v585_v44, %v593_v45 }
 0x106   : > { %2125 = vmatpush1.bf16.msra.mxu0 %v4018_v47  ;;  %2166 = vmatpush1.bf16.msra.mxu1 %v4020_v48  ;;  %v586_v47 = vld [vmem:[%s5297_s23 + $0x618] sm:$0xff]  ;;  %v4149_v48 = vcombine.high %v570_v38, %v578_v40  ;;  %v451_v40 = vld [vmem:[%s5297_s23 + $0x1e0] sm:$0xff] }
 0x107   : > { %2126 = vmatprep.subr.bf16.mxu0 %v4035_v49  ;;  %2167 = vmatprep.subr.bf16.mxu1 %v4037_v53  ;;  %v594_v49 = vld [vmem:[%s5297_s23 + $0x658] sm:$0xff]  ;;  %v601_v53 = vld [vmem:[%s5297_s23 + $0x690] sm:$0xff] }
 0x108   : > { %v4164_v61 = vcombine.low %v586_v47, %v594_v49  ;;  %v4179_v62 = vcombine.high %v601_v53, %v609_v54  ;;  %v4178_v5 = vcombine.low %v601_v53, %v609_v54 }
 0x10a   : > { %2127 = vmatpush1.bf16.msra.mxu0 %v4034_v55  ;;  %2168 = vmatpush1.bf16.msra.mxu1 %v4036_v57  ;;  %v602_v55 = vld [vmem:[%s5297_s23 + $0x698] sm:$0xff]  ;;  %v4165_v57 = vcombine.high %v586_v47, %v594_v49  ;;  %v467_v49 = vld [vmem:[%s5297_s23 + $0x260] sm:$0xff] }
 0x10b   : > { %2128 = vmatprep.subr.bf16.mxu0 %v4051_v58  ;;  %2169 = vmatprep.subr.bf16.mxu1 %v4053_v63  ;;  %v610_v58 = vld [vmem:[%s5297_s23 + $0x6d8] sm:$0xff]  ;;  %v617_v63 = vld [vmem:[%s5297_s23 + $0x710] sm:$0xff] }
 0x10c   : > { %v4180_v6 = vcombine.low %v602_v55, %v610_v58  ;;  %v4195_v7 = vcombine.high %v617_v63, %v625_v0  ;;  %v4194_v13 = vcombine.low %v617_v63, %v625_v0 }
 0x10e   : > { %2129 = vmatpush1.bf16.msra.mxu0 %v4050_v1  ;;  %2170 = vmatpush1.bf16.msra.mxu1 %v4052_v2  ;;  %v618_v1 = vld [vmem:[%s5297_s23 + $0x718] sm:$0xff]  ;;  %v4181_v2 = vcombine.high %v602_v55, %v610_v58  ;;  %v483_v58 = vld [vmem:[%s5297_s23 + $0x2e0] sm:$0xff] }
 0x10f   : > { %2130 = vmatprep.subr.bf16.mxu0 %v4067_v4  ;;  %2171 = vmatprep.subr.bf16.mxu1 %v4069_v8  ;;  %v626_v4 = vld [vmem:[%s5297_s23 + $0x758] sm:$0xff]  ;;  %v633_v8 = vld [vmem:[%s5297_s23 + $0x790] sm:$0xff] }
 0x110   : > { %v4196_v14 = vcombine.low %v618_v1, %v626_v4  ;;  %v4211_v15 = vcombine.high %v633_v8, %v641_v9  ;;  %v4210_v22 = vcombine.low %v633_v8, %v641_v9 }
 0x112   : > { %2131 = vmatpush1.bf16.msra.mxu0 %v4066_v10  ;;  %2172 = vmatpush1.bf16.msra.mxu1 %v4068_v11  ;;  %v634_v10 = vld [vmem:[%s5297_s23 + $0x798] sm:$0xff]  ;;  %v4197_v11 = vcombine.high %v618_v1, %v626_v4  ;;  %v499_v4 = vld [vmem:[%s5297_s23 + $0x360] sm:$0xff] }
 0x113   : > { %2132 = vmatprep.subr.bf16.mxu0 %v4083_v12  ;;  %2173 = vmatprep.subr.bf16.mxu1 %v4085_v16  ;;  %v642_v12 = vld [vmem:[%s5297_s23 + $0x7d8] sm:$0xff]  ;;  %v395_v16 = vld [vmem:[%s5297_s23 + $0x20] sm:$0xff] }
 0x114   : > { %v4212_v23 = vcombine.low %v634_v10, %v642_v12  ;;  %v3975_v24 = vcombine.high %v395_v16, %v403_v17  ;;  %v3974_v30 = vcombine.low %v395_v16, %v403_v17 }
 0x116   : > { %2133 = vmatpush1.bf16.msra.mxu0 %v4082_v18  ;;  %2174 = vmatpush1.bf16.msra.mxu1 %v4084_v19  ;;  %v396_v18 = vld [vmem:[%s5297_s23 + $0x28] sm:$0xff]  ;;  %v4213_v19 = vcombine.high %v634_v10, %v642_v12  ;;  %v507_v12 = vld [vmem:[%s5297_s23 + $0x3a0] sm:$0xff] }
 0x117   : > { %2134 = vmatprep.subr.bf16.mxu0 %v4099_v20  ;;  %2175 = vmatprep.subr.bf16.mxu1 %v4101_v25  ;;  %v404_v20 = vld [vmem:[%s5297_s23 + $0x68] sm:$0xff]  ;;  %v411_v25 = vld [vmem:[%s5297_s23 + $0xa0] sm:$0xff] }
 0x118   : > { %v3976_v31 = vcombine.low %v396_v18, %v404_v20  ;;  %v3991_v56 = vcombine.high %v411_v25, %v419_v26  ;;  %v3990_v36 = vcombine.low %v411_v25, %v419_v26 }
 0x11a   : > { %2135 = vmatpush1.bf16.msra.mxu0 %v4098_v27  ;;  %2176 = vmatpush1.bf16.msra.mxu1 %v4100_v28  ;;  %v412_v27 = vld [vmem:[%s5297_s23 + $0xa8] sm:$0xff]  ;;  %v3977_v28 = vcombine.high %v396_v18, %v404_v20  ;;  %v523_v20 = vld [vmem:[%s5297_s23 + $0x420] sm:$0xff] }
 0x11b   : > { %2136 = vmatprep.subr.bf16.mxu0 %v4115_v29  ;;  %2177 = vmatprep.subr.bf16.mxu1 %v4117_v59  ;;  %v420_v29 = vld [vmem:[%s5297_s23 + $0xe8] sm:$0xff] }
 0x11c   : > { %v3993_v59 = vcombine.high %v412_v27, %v420_v29  ;;  %v3992_v37 = vcombine.low %v412_v27, %v420_v29  ;;  %v539_v29 = vld [vmem:[%s5297_s23 + $0x4a0] sm:$0xff] }
 0x11e   : > { %2137 = vmatpush1.bf16.msra.mxu0 %v4114_v33  ;;  %2178 = vmatpush1.bf16.msra.mxu1 %v4116_v34  ;;  %v435_v33 = vld [vmem:[%s5297_s23 + $0x160] sm:$0xff]  ;;  %v428_v34 = vld [vmem:[%s5297_s23 + $0x128] sm:$0xff] }
 0x11f   : > { %2138 = vmatprep.subr.bf16.mxu0 %v4131_v35  ;;  %2179 = vmatprep.subr.bf16.mxu1 %v4133_v39  ;;  %v436_v35 = vld [vmem:[%s5297_s23 + $0x168] sm:$0xff]  ;;  %v4007_v38 = vcombine.high %v427_v32, %v435_v33  ;;  %v443_v39 = vld [vmem:[%s5297_s23 + $0x1a0] sm:$0xff]  ;;  %v4006_v44 = vcombine.low %v427_v32, %v435_v33 }
 0x120   : > { %v4008_v45 = vcombine.low %v428_v34, %v436_v35  ;;  %v4023_v47 = vcombine.high %v443_v39, %v451_v40  ;;  %v4022_v53 = vcombine.low %v443_v39, %v451_v40  ;;  %v555_v32 = vld [vmem:[%s5297_s23 + $0x520] sm:$0xff] }
 0x121   : > { %v563_v33 = vld [vmem:[%s5297_s23 + $0x560] sm:$0xff] }
 0x122   : > { %2139 = vmatpush1.bf16.msra.mxu0 %v4130_v41  ;;  %2180 = vmatpush1.bf16.msra.mxu1 %v4132_v42  ;;  %v4009_v41 = vcombine.high %v428_v34, %v436_v35  ;;  %v444_v42 = vld [vmem:[%s5297_s23 + $0x1a8] sm:$0xff] }
 0x123   : > { %2140 = vmatprep.subr.bf16.mxu0 %v4147_v43  ;;  %2181 = vmatprep.subr.bf16.mxu1 %v4149_v48  ;;  %v452_v43 = vld [vmem:[%s5297_s23 + $0x1e8] sm:$0xff]  ;;  %v459_v48 = vld [vmem:[%s5297_s23 + $0x220] sm:$0xff] }
 0x124   : > { %v4024_v54 = vcombine.low %v444_v42, %v452_v43  ;;  %v4039_v55 = vcombine.high %v459_v48, %v467_v49  ;;  %v4038_v63 = vcombine.low %v459_v48, %v467_v49  ;;  %v4134_v48 = vcombine.low %v555_v32, %v563_v33  ;;  %v587_v49 = vld [vmem:[%s5297_s23 + $0x620] sm:$0xff] }
 0x126   : > { %2141 = vmatpush1.bf16.msra.mxu0 %v4146_v50  ;;  %2182 = vmatpush1.bf16.msra.mxu1 %v4148_v51  ;;  %v4025_v50 = vcombine.high %v444_v42, %v452_v43  ;;  %v460_v51 = vld [vmem:[%s5297_s23 + $0x228] sm:$0xff]  ;;  %v571_v42 = vld [vmem:[%s5297_s23 + $0x5a0] sm:$0xff] }
 0x127   : > { %2142 = vmatprep.subr.bf16.mxu0 %v4163_v52  ;;  %2183 = vmatprep.subr.bf16.mxu1 %v4165_v57  ;;  %v468_v52 = vld [vmem:[%s5297_s23 + $0x268] sm:$0xff]  ;;  %v475_v57 = vld [vmem:[%s5297_s23 + $0x2a0] sm:$0xff] }
 0x128   : > { %v4040_v0 = vcombine.low %v460_v51, %v468_v52  ;;  %v4055_v1 = vcombine.high %v475_v57, %v483_v58  ;;  %v4054_v8 = vcombine.low %v475_v57, %v483_v58  ;;  %v579_v43 = vld [vmem:[%s5297_s23 + $0x5e0] sm:$0xff] }
 0x129   : > { %v4150_v57 = vcombine.low %v571_v42, %v579_v43  ;;  %v603_v58 = vld [vmem:[%s5297_s23 + $0x6a0] sm:$0xff] }
 0x12a   : > { %2143 = vmatpush1.bf16.msra.mxu0 %v4162_v60  ;;  %2184 = vmatpush1.bf16.msra.mxu1 %v4164_v61  ;;  %v4041_v60 = vcombine.high %v460_v51, %v468_v52  ;;  %v476_v61 = vld [vmem:[%s5297_s23 + $0x2a8] sm:$0xff]  ;;  %v4151_v51 = vcombine.high %v571_v42, %v579_v43  ;;  %v595_v52 = vld [vmem:[%s5297_s23 + $0x660] sm:$0xff] }
 0x12b   : > { %2144 = vmatprep.subr.bf16.mxu0 %v4179_v62  ;;  %2185 = vmatprep.subr.bf16.mxu1 %v4181_v2  ;;  %v484_v62 = vld [vmem:[%s5297_s23 + $0x2e8] sm:$0xff]  ;;  %v491_v2 = vld [vmem:[%s5297_s23 + $0x320] sm:$0xff] }
 0x12c   : > { %v4056_v9 = vcombine.low %v476_v61, %v484_v62  ;;  %v4071_v10 = vcombine.high %v491_v2, %v499_v4  ;;  %v4070_v16 = vcombine.low %v491_v2, %v499_v4  ;;  %v4166_v2 = vcombine.low %v587_v49, %v595_v52  ;;  %v619_v4 = vld [vmem:[%s5297_s23 + $0x720] sm:$0xff] }
 0x12e   : > { %2145 = vmatpush1.bf16.msra.mxu0 %v4178_v5  ;;  %2186 = vmatpush1.bf16.msra.mxu1 %v4180_v6  ;;  %v4057_v5 = vcombine.high %v476_v61, %v484_v62  ;;  %v492_v6 = vld [vmem:[%s5297_s23 + $0x328] sm:$0xff]  ;;  %v4167_v61 = vcombine.high %v587_v49, %v595_v52  ;;  %v611_v62 = vld [vmem:[%s5297_s23 + $0x6e0] sm:$0xff]  ;;  %v446_v49 = vld [vmem:[%s5297_s23 + $0x1b8] sm:$0xff] }
 0x12f   : > { %2146 = vmatprep.subr.bf16.mxu0 %v4195_v7  ;;  %2187 = vmatprep.subr.bf16.mxu1 %v4197_v11  ;;  %v500_v7 = vld [vmem:[%s5297_s23 + $0x368] sm:$0xff] }
 0x130   : > { %v4073_v11 = vcombine.high %v492_v6, %v500_v7  ;;  %v4072_v17 = vcombine.low %v492_v6, %v500_v7  ;;  %v4183_v6 = vcombine.high %v603_v58, %v611_v62  ;;  %v627_v7 = vld [vmem:[%s5297_s23 + $0x760] sm:$0xff] }
 0x132   : > { %2147 = vmatpush1.bf16.msra.mxu0 %v4194_v13  ;;  %2188 = vmatpush1.bf16.msra.mxu1 %v4196_v14  ;;  %v515_v13 = vld [vmem:[%s5297_s23 + $0x3e0] sm:$0xff]  ;;  %v508_v14 = vld [vmem:[%s5297_s23 + $0x3a8] sm:$0xff] }
 0x133   : > { %2148 = vmatprep.subr.bf16.mxu0 %v4211_v15  ;;  %2189 = vmatprep.subr.bf16.mxu1 %v4213_v19  ;;  %v516_v15 = vld [vmem:[%s5297_s23 + $0x3e8] sm:$0xff]  ;;  %v4087_v18 = vcombine.high %v507_v12, %v515_v13  ;;  %v4086_v25 = vcombine.low %v507_v12, %v515_v13  ;;  %v635_v12 = vld [vmem:[%s5297_s23 + $0x7a0] sm:$0xff] }
 0x134   : > { %v4089_v19 = vcombine.high %v508_v14, %v516_v15  ;;  %v4088_v26 = vcombine.low %v508_v14, %v516_v15  ;;  %v4199_v14 = vcombine.high %v619_v4, %v627_v7  ;;  %v643_v15 = vld [vmem:[%s5297_s23 + $0x7e0] sm:$0xff] }
 0x136   : > { %2149 = vmatpush1.bf16.msra.mxu0 %v4210_v22  ;;  %2190 = vmatpush1.bf16.msra.mxu1 %v4212_v23  ;;  %v531_v22 = vld [vmem:[%s5297_s23 + $0x460] sm:$0xff]  ;;  %v524_v23 = vld [vmem:[%s5297_s23 + $0x428] sm:$0xff] }
 0x137   : > { %2200 = vmatprep.subr.bf16.mxu0 %v3975_v24  ;;  %2241 = vmatprep.subr.bf16.mxu1 %v3977_v28  ;;  %v532_v24 = vld [vmem:[%s5297_s23 + $0x468] sm:$0xff]  ;;  %v4103_v27 = vcombine.high %v523_v20, %v531_v22 }
 0x138   : > { %v4105_v28 = vcombine.high %v524_v23, %v532_v24  ;;  %v4104_v34 = vcombine.low %v524_v23, %v532_v24  ;;  %v4215_v24 = vcombine.high %v635_v12, %v643_v15 }
 0x139   : > { %2151 = vmatmul.mubr.bf16.vlgmr.msra.gmra.mrb[4].mxu0 %v5399_v21  ;;  %2192 = vmatmul.mubr.bf16.vlgmr.msra.gmra.mrb[4].mxu1 %v5399_v21 }
 0x13a   : > { %2201 = vmatpush1.bf16.msra.mxu0 %v3974_v30  ;;  %2242 = vmatpush1.bf16.msra.mxu1 %v3976_v31  ;;  %v547_v30 = vld [vmem:[%s5297_s23 + $0x4e0] sm:$0xff]  ;;  %v540_v31 = vld [vmem:[%s5297_s23 + $0x4a8] sm:$0xff] }
 0x13b   : > { %2202 = vmatprep.subr.bf16.mxu0 %v3991_v56  ;;  %2243 = vmatprep.subr.bf16.mxu1 %v3993_v59  ;;  %v548_v56 = vld [vmem:[%s5297_s23 + $0x4e8] sm:$0xff]  ;;  %v4102_v59 = vcombine.low %v523_v20, %v531_v22  ;;  %v4119_v35 = vcombine.high %v539_v29, %v547_v30  ;;  %v4118_v39 = vcombine.low %v539_v29, %v547_v30  ;;  %v397_v20 = vld [vmem:[%s5297_s23 + $0x30] sm:$0xff] }
 0x13c   : > { %2232 = vmatprep.mubr.bf16.mxu0 %v5355_v3  ;;  %2273 = vmatprep.mubr.bf16.mxu1 %v5355_v3  ;;  %v4120_v40 = vcombine.low %v540_v31, %v548_v56  ;;  %v405_v22 = vld [vmem:[%s5297_s23 + $0x70] sm:$0xff] }
 0x13d   : > { %v413_v29 = vld [vmem:[%s5297_s23 + $0xb0] sm:$0xff] }
 0x13e   : > { %2203 = vmatpush1.bf16.msra.mxu0 %v3990_v36  ;;  %2244 = vmatpush1.bf16.msra.mxu1 %v3992_v37  ;;  %v556_v36 = vld [vmem:[%s5297_s23 + $0x528] sm:$0xff] }
 0x13f   : > { %2204 = vmatprep.subr.bf16.mxu0 %v4007_v38  ;;  %2245 = vmatprep.subr.bf16.mxu1 %v4009_v41  ;;  %v564_v37 = vld [vmem:[%s5297_s23 + $0x568] sm:$0xff]  ;;  %v4121_v38 = vcombine.high %v540_v31, %v548_v56  ;;  %v4135_v41 = vcombine.high %v555_v32, %v563_v33  ;;  %v3979_v31 = vcombine.high %v397_v20, %v405_v22  ;;  %v414_v32 = vld [vmem:[%s5297_s23 + $0xb8] sm:$0xff] }
 0x140   : > { %v422_v33 = vld [vmem:[%s5297_s23 + $0xf8] sm:$0xff] }
 0x141   : > { %v3996_v43 = vcombine.low %v414_v32, %v422_v33 }
 0x142   : > { %2205 = vmatpush1.bf16.msra.mxu0 %v4006_v44  ;;  %2246 = vmatpush1.bf16.msra.mxu1 %v4008_v45  ;;  %v572_v44 = vld [vmem:[%s5297_s23 + $0x5a8] sm:$0xff]  ;;  %v4137_v45 = vcombine.high %v556_v36, %v564_v37 }
 0x143   : > { %2206 = vmatprep.subr.bf16.mxu0 %v4023_v47  ;;  %2247 = vmatprep.subr.bf16.mxu1 %v4025_v50  ;;  %v580_v47 = vld [vmem:[%s5297_s23 + $0x5e8] sm:$0xff]  ;;  %v4136_v50 = vcombine.low %v556_v36, %v564_v37  ;;  %v3997_v37 = vcombine.high %v414_v32, %v422_v33  ;;  %v541_v32 = vld [vmem:[%s5297_s23 + $0x4b0] sm:$0xff] }
 0x144   : > { %v549_v33 = vld [vmem:[%s5297_s23 + $0x4f0] sm:$0xff] }
 0x146   : > { %2207 = vmatpush1.bf16.msra.mxu0 %v4022_v53  ;;  %2248 = vmatpush1.bf16.msra.mxu1 %v4024_v54  ;;  %v588_v53 = vld [vmem:[%s5297_s23 + $0x628] sm:$0xff]  ;;  %v4153_v54 = vcombine.high %v572_v44, %v580_v47 }
 0x147   : > { %2208 = vmatprep.subr.bf16.mxu0 %v4039_v55  ;;  %2249 = vmatprep.subr.bf16.mxu1 %v4041_v60  ;;  %v596_v55 = vld [vmem:[%s5297_s23 + $0x668] sm:$0xff]  ;;  %v4152_v60 = vcombine.low %v572_v44, %v580_v47  ;;  %v445_v47 = vld [vmem:[%s5297_s23 + $0x1b0] sm:$0xff] }
 0x14a   : > { %2209 = vmatpush1.bf16.msra.mxu0 %v4038_v63  ;;  %2250 = vmatpush1.bf16.msra.mxu1 %v4040_v0  ;;  %v604_v63 = vld [vmem:[%s5297_s23 + $0x6a8] sm:$0xff]  ;;  %v4169_v0 = vcombine.high %v588_v53, %v596_v55 }
 0x14b   : > { %2210 = vmatprep.subr.bf16.mxu0 %v4055_v1  ;;  %2251 = vmatprep.subr.bf16.mxu1 %v4057_v5  ;;  %v612_v1 = vld [vmem:[%s5297_s23 + $0x6e8] sm:$0xff]  ;;  %v4168_v5 = vcombine.low %v588_v53, %v596_v55  ;;  %v461_v55 = vld [vmem:[%s5297_s23 + $0x230] sm:$0xff] }
 0x14c   : > { %v4184_v13 = vcombine.low %v604_v63, %v612_v1 }
 0x14e   : > { %2211 = vmatpush1.bf16.msra.mxu0 %v4054_v8  ;;  %2252 = vmatpush1.bf16.msra.mxu1 %v4056_v9  ;;  %v620_v8 = vld [vmem:[%s5297_s23 + $0x728] sm:$0xff]  ;;  %v4185_v9 = vcombine.high %v604_v63, %v612_v1  ;;  %v485_v1 = vld [vmem:[%s5297_s23 + $0x2f0] sm:$0xff] }
 0x14f   : > { %2212 = vmatprep.subr.bf16.mxu0 %v4071_v10  ;;  %2253 = vmatprep.subr.bf16.mxu1 %v4073_v11  ;;  %v628_v10 = vld [vmem:[%s5297_s23 + $0x768] sm:$0xff]  ;;  %v4182_v11 = vcombine.low %v603_v58, %v611_v62  ;;  %v462_v58 = vld [vmem:[%s5297_s23 + $0x238] sm:$0xff] }
 0x150   : > { %v4200_v23 = vcombine.low %v620_v8, %v628_v10 }
 0x152   : > { %2213 = vmatpush1.bf16.msra.mxu0 %v4070_v16  ;;  %2254 = vmatpush1.bf16.msra.mxu1 %v4072_v17  ;;  %v636_v16 = vld [vmem:[%s5297_s23 + $0x7a8] sm:$0xff]  ;;  %v4201_v17 = vcombine.high %v620_v8, %v628_v10  ;;  %v501_v10 = vld [vmem:[%s5297_s23 + $0x370] sm:$0xff] }
 0x153   : > { %2214 = vmatprep.subr.bf16.mxu0 %v4087_v18  ;;  %2255 = vmatprep.subr.bf16.mxu1 %v4089_v19  ;;  %v644_v18 = vld [vmem:[%s5297_s23 + $0x7e8] sm:$0xff]  ;;  %v4198_v19 = vcombine.low %v619_v4, %v627_v7  ;;  %v486_v4 = vld [vmem:[%s5297_s23 + $0x2f8] sm:$0xff] }
 0x154   : > { %v4216_v30 = vcombine.low %v636_v16, %v644_v18 }
 0x156   : > { %2215 = vmatpush1.bf16.msra.mxu0 %v4086_v25  ;;  %2256 = vmatpush1.bf16.msra.mxu1 %v4088_v26  ;;  %v398_v25 = vld [vmem:[%s5297_s23 + $0x38] sm:$0xff] }
 0x157   : > { %2216 = vmatprep.subr.bf16.mxu0 %v4103_v27  ;;  %2257 = vmatprep.subr.bf16.mxu1 %v4105_v28  ;;  %v406_v26 = vld [vmem:[%s5297_s23 + $0x78] sm:$0xff]  ;;  %v4217_v27 = vcombine.high %v636_v16, %v644_v18  ;;  %v4214_v28 = vcombine.low %v635_v12, %v643_v15  ;;  %v517_v18 = vld [vmem:[%s5297_s23 + $0x3f0] sm:$0xff] }
 0x158   : > { %v3981_v56 = vcombine.high %v398_v25, %v406_v26  ;;  %v502_v12 = vld [vmem:[%s5297_s23 + $0x378] sm:$0xff] }
 0x15a   : > { %2217 = vmatpush1.bf16.msra.mxu0 %v4102_v59  ;;  %2258 = vmatpush1.bf16.msra.mxu1 %v4104_v34  ;;  %v421_v59 = vld [vmem:[%s5297_s23 + $0xf0] sm:$0xff]  ;;  %v3978_v34 = vcombine.low %v397_v20, %v405_v22  ;;  %v518_v20 = vld [vmem:[%s5297_s23 + $0x3f8] sm:$0xff] }
 0x15b   : > { %2218 = vmatprep.subr.bf16.mxu0 %v4119_v35  ;;  %2259 = vmatprep.subr.bf16.mxu1 %v4121_v38  ;;  %v3980_v35 = vcombine.low %v398_v25, %v406_v26  ;;  %v3995_v36 = vcombine.high %v413_v29, %v421_v59  ;;  %v429_v38 = vld [vmem:[%s5297_s23 + $0x130] sm:$0xff]  ;;  %v3994_v42 = vcombine.low %v413_v29, %v421_v59  ;;  %v534_v29 = vld [vmem:[%s5297_s23 + $0x478] sm:$0xff] }
 0x15c   : > { %v525_v26 = vld [vmem:[%s5297_s23 + $0x430] sm:$0xff] }
 0x15e   : > { %2219 = vmatpush1.bf16.msra.mxu0 %v4118_v39  ;;  %2260 = vmatpush1.bf16.msra.mxu1 %v4120_v40  ;;  %v437_v39 = vld [vmem:[%s5297_s23 + $0x170] sm:$0xff]  ;;  %v430_v40 = vld [vmem:[%s5297_s23 + $0x138] sm:$0xff] }
 0x15f   : > { %2220 = vmatprep.subr.bf16.mxu0 %v4135_v41  ;;  %2261 = vmatprep.subr.bf16.mxu1 %v4137_v45  ;;  %v438_v41 = vld [vmem:[%s5297_s23 + $0x178] sm:$0xff]  ;;  %v4011_v44 = vcombine.high %v429_v38, %v437_v39 }
 0x160   : > { %v4013_v45 = vcombine.high %v430_v40, %v438_v41  ;;  %v4012_v52 = vcombine.low %v430_v40, %v438_v41  ;;  %v557_v40 = vld [vmem:[%s5297_s23 + $0x530] sm:$0xff] }
 0x161   : > { %v565_v41 = vld [vmem:[%s5297_s23 + $0x570] sm:$0xff] }
 0x162   : > { %2221 = vmatpush1.bf16.msra.mxu0 %v4134_v48  ;;  %2262 = vmatpush1.bf16.msra.mxu1 %v4136_v50  ;;  %v453_v48 = vld [vmem:[%s5297_s23 + $0x1f0] sm:$0xff]  ;;  %v454_v50 = vld [vmem:[%s5297_s23 + $0x1f8] sm:$0xff] }
 0x163   : > { %2222 = vmatprep.subr.bf16.mxu0 %v4151_v51  ;;  %2263 = vmatprep.subr.bf16.mxu1 %v4153_v54  ;;  %v4010_v51 = vcombine.low %v429_v38, %v437_v39  ;;  %v4027_v53 = vcombine.high %v445_v47, %v453_v48  ;;  %v4029_v54 = vcombine.high %v446_v49, %v454_v50 }
 0x164   : > { %v4123_v38 = vcombine.high %v541_v32, %v549_v33 }
 0x166   : > { %2223 = vmatpush1.bf16.msra.mxu0 %v4150_v57  ;;  %2264 = vmatpush1.bf16.msra.mxu1 %v4152_v60  ;;  %v469_v57 = vld [vmem:[%s5297_s23 + $0x270] sm:$0xff]  ;;  %v470_v60 = vld [vmem:[%s5297_s23 + $0x278] sm:$0xff] }
 0x167   : > { %2224 = vmatprep.subr.bf16.mxu0 %v4167_v61  ;;  %2265 = vmatprep.subr.bf16.mxu1 %v4169_v0  ;;  %v4026_v61 = vcombine.low %v445_v47, %v453_v48  ;;  %v4043_v62 = vcombine.high %v461_v55, %v469_v57  ;;  %v4045_v63 = vcombine.high %v462_v58, %v470_v60  ;;  %v477_v0 = vld [vmem:[%s5297_s23 + $0x2b0] sm:$0xff] }
 0x168   : > { %v4059_v7 = vcombine.high %v477_v0, %v485_v1  ;;  %v4139_v47 = vcombine.high %v557_v40, %v565_v41 }
 0x16a   : > { %2225 = vmatpush1.bf16.msra.mxu0 %v4166_v2  ;;  %2266 = vmatpush1.bf16.msra.mxu1 %v4168_v5  ;;  %v478_v2 = vld [vmem:[%s5297_s23 + $0x2b8] sm:$0xff]  ;;  %v4042_v5 = vcombine.low %v461_v55, %v469_v57 }
 0x16b   : > { %2226 = vmatprep.subr.bf16.mxu0 %v4183_v6  ;;  %2267 = vmatprep.subr.bf16.mxu1 %v4185_v9  ;;  %v4044_v6 = vcombine.low %v462_v58, %v470_v60  ;;  %v4061_v8 = vcombine.high %v478_v2, %v486_v4  ;;  %v493_v9 = vld [vmem:[%s5297_s23 + $0x330] sm:$0xff] }
 0x16c   : > { %v4075_v15 = vcombine.high %v493_v9, %v501_v10  ;;  %v4074_v22 = vcombine.low %v493_v9, %v501_v10  ;;  %v589_v58 = vld [vmem:[%s5297_s23 + $0x630] sm:$0xff] }
 0x16d   : > { %v597_v60 = vld [vmem:[%s5297_s23 + $0x670] sm:$0xff] }
 0x16e   : > { %2227 = vmatpush1.bf16.msra.mxu0 %v4182_v11  ;;  %2268 = vmatpush1.bf16.msra.mxu1 %v4184_v13  ;;  %v494_v11 = vld [vmem:[%s5297_s23 + $0x338] sm:$0xff]  ;;  %v4058_v13 = vcombine.low %v477_v0, %v485_v1  ;;  %v4171_v0 = vcombine.high %v589_v58, %v597_v60 }
 0x16f   : > { %2228 = vmatprep.subr.bf16.mxu0 %v4199_v14  ;;  %2269 = vmatprep.subr.bf16.mxu1 %v4201_v17  ;;  %v4060_v14 = vcombine.low %v478_v2, %v486_v4  ;;  %v4077_v16 = vcombine.high %v494_v11, %v502_v12  ;;  %v509_v17 = vld [vmem:[%s5297_s23 + $0x3b0] sm:$0xff] }
 0x170   : > { %v605_v2 = vld [vmem:[%s5297_s23 + $0x6b0] sm:$0xff] }
 0x171   : > { %v613_v4 = vld [vmem:[%s5297_s23 + $0x6f0] sm:$0xff] }
 0x172   : > { %2229 = vmatpush1.bf16.msra.mxu0 %v4198_v19  ;;  %2270 = vmatpush1.bf16.msra.mxu1 %v4200_v23  ;;  %v510_v19 = vld [vmem:[%s5297_s23 + $0x3b8] sm:$0xff]  ;;  %v4076_v23 = vcombine.low %v494_v11, %v502_v12  ;;  %v4187_v9 = vcombine.high %v605_v2, %v613_v4  ;;  %v621_v11 = vld [vmem:[%s5297_s23 + $0x730] sm:$0xff] }
 0x173   : > { %2230 = vmatprep.subr.bf16.mxu0 %v4215_v24  ;;  %2271 = vmatprep.subr.bf16.mxu1 %v4217_v27  ;;  %v4091_v24 = vcombine.high %v509_v17, %v517_v18  ;;  %v4093_v25 = vcombine.high %v510_v19, %v518_v20  ;;  %v533_v27 = vld [vmem:[%s5297_s23 + $0x470] sm:$0xff] }
 0x174   : > { %v629_v12 = vld [vmem:[%s5297_s23 + $0x770] sm:$0xff] }
 0x176   : > { %2231 = vmatpush1.bf16.msra.mxu0 %v4214_v28  ;;  %2272 = vmatpush1.bf16.msra.mxu1 %v4216_v30  ;;  %v526_v28 = vld [vmem:[%s5297_s23 + $0x438] sm:$0xff]  ;;  %v4090_v30 = vcombine.low %v509_v17, %v517_v18  ;;  %v4203_v17 = vcombine.high %v621_v11, %v629_v12 }
 0x177   : > { %2282 = vmatprep.subr.bf16.mxu0 %v3979_v31  ;;  %2323 = vmatprep.subr.bf16.mxu1 %v3981_v56  ;;  %v4092_v31 = vcombine.low %v510_v19, %v518_v20  ;;  %v4107_v56 = vcombine.high %v525_v26, %v533_v27  ;;  %v4109_v59 = vcombine.high %v526_v28, %v534_v29  ;;  %v637_v19 = vld [vmem:[%s5297_s23 + $0x7b0] sm:$0xff] }
 0x178   : > { %v645_v20 = vld [vmem:[%s5297_s23 + $0x7f0] sm:$0xff] }
 0x179   : > { %2233 = vmatmul.mubr.bf16.vlgmr.msra.gmra.mrb[8].mxu0 %v5399_v21  ;;  %2274 = vmatmul.mubr.bf16.vlgmr.msra.gmra.mrb[8].mxu1 %v5399_v21 }
 0x17a   : > { %2283 = vmatpush1.bf16.msra.mxu0 %v3978_v34  ;;  %2324 = vmatpush1.bf16.msra.mxu1 %v3980_v35  ;;  %v542_v34 = vld [vmem:[%s5297_s23 + $0x4b8] sm:$0xff] }
 0x17b   : > { %2284 = vmatprep.subr.bf16.mxu0 %v3995_v36  ;;  %2325 = vmatprep.subr.bf16.mxu1 %v3997_v37  ;;  %v550_v35 = vld [vmem:[%s5297_s23 + $0x4f8] sm:$0xff]  ;;  %v4106_v36 = vcombine.low %v525_v26, %v533_v27  ;;  %v4108_v37 = vcombine.low %v526_v28, %v534_v29  ;;  %v4219_v26 = vcombine.high %v637_v19, %v645_v20 }
 0x17c   : > { %2314 = vmatprep.mubr.bf16.mxu0 %v5355_v3  ;;  %2355 = vmatprep.mubr.bf16.mxu1 %v5355_v3  ;;  %v4028_v3 = vcombine.low %v446_v49, %v454_v50  ;;  %v4125_v39 = vcombine.high %v542_v34, %v550_v35  ;;  %v573_v49 = vld [vmem:[%s5297_s23 + $0x5b0] sm:$0xff]  ;;  %v4218_v28 = vcombine.low %v637_v19, %v645_v20  ;;  %v4657_v20 = vld [vmem:[%s5307_s12 + $0x38] sm:$0xff]  }
 0x17d   : > { %v581_v50 = vld [vmem:[%s5297_s23 + $0x5f0] sm:$0xff] }
 0x17e   : > { %2285 = vmatpush1.bf16.msra.mxu0 %v3994_v42  ;;  %2326 = vmatpush1.bf16.msra.mxu1 %v3996_v43  ;;  %v558_v42 = vld [vmem:[%s5297_s23 + $0x538] sm:$0xff]  ;;  %v4155_v55 = vcombine.high %v573_v49, %v581_v50 }
 0x17f   : > { %2286 = vmatprep.subr.bf16.mxu0 %v4011_v44  ;;  %2327 = vmatprep.subr.bf16.mxu1 %v4013_v45  ;;  %v566_v43 = vld [vmem:[%s5297_s23 + $0x578] sm:$0xff]  ;;  %v4122_v44 = vcombine.low %v541_v32, %v549_v33  ;;  %v4124_v45 = vcombine.low %v542_v34, %v550_v35  ;;  %v4631_v32 = vld [vmem:[%s5307_s12 + $0x48] sm:$0xff]  }
 0x180   : > { %v4141_v48 = vcombine.high %v558_v42, %v566_v43  ;;  %v4632_v33 = vld [vmem:[%s5307_s12 + $0xc8] sm:$0xff]  }
 0x181   : > { %v4633_v34 = vld [vmem:[%s5307_s12 + $0x8] sm:$0xff]  }
 0x182   : > { %2287 = vmatpush1.bf16.msra.mxu0 %v4010_v51  ;;  %2328 = vmatpush1.bf16.msra.mxu1 %v4012_v52  ;;  %v574_v51 = vld [vmem:[%s5297_s23 + $0x5b8] sm:$0xff]  ;;  %v4634_v35 = vld [vmem:[%s5307_s12 + $0x88] sm:$0xff]  }
 0x183   : > { %2288 = vmatprep.subr.bf16.mxu0 %v4027_v53  ;;  %2329 = vmatprep.subr.bf16.mxu1 %v4029_v54  ;;  %v582_v52 = vld [vmem:[%s5297_s23 + $0x5f8] sm:$0xff]  ;;  %v4138_v53 = vcombine.low %v557_v40, %v565_v41  ;;  %v4140_v54 = vcombine.low %v558_v42, %v566_v43  ;;  %v4643_v43 = vld [vmem:[%s5307_s12 + $0x60] sm:$0xff]  }
 0x184   : > { %v4157_v57 = vcombine.high %v574_v51, %v582_v52  ;;  %v4640_v40 = vld [vmem:[%s5307_s12 + $0xd8] sm:$0xff]  }
 0x185   : > { %v4641_v41 = vld [vmem:[%s5307_s12 + $0x18] sm:$0xff]  }
 0x186   : > { %2289 = vmatpush1.bf16.msra.mxu0 %v4026_v61  ;;  %2330 = vmatpush1.bf16.msra.mxu1 %v4028_v3  ;;  %v590_v61 = vld [vmem:[%s5297_s23 + $0x638] sm:$0xff] }
 0x187   : > { %2290 = vmatprep.subr.bf16.mxu0 %v4043_v62  ;;  %2331 = vmatprep.subr.bf16.mxu1 %v4045_v63  ;;  %v598_v3 = vld [vmem:[%s5297_s23 + $0x678] sm:$0xff]  ;;  %v4154_v62 = vcombine.low %v573_v49, %v581_v50  ;;  %v4156_v63 = vcombine.low %v574_v51, %v582_v52  ;;  %v5623_v49 = vld [vmem:[%s5305_s6] sm:$0xff]  ;;  %v653_v50 = vsub.s32 0, %v5337_v46  ;;  %v665_v51 = vsub.s32 3, %v5337_v46  ;;  %v4647_v52 = vld [vmem:[%s5307_s12 + $0x68] sm:$0xff]  }
 0x188   : > { %v4173_v1 = vcombine.high %v590_v61, %v598_v3  ;;  %v4642_v42 = vld [vmem:[%s5307_s12 + $0x98] sm:$0xff]  }
 0x18a   : > { %2291 = vmatpush1.bf16.msra.mxu0 %v4042_v5  ;;  %2332 = vmatpush1.bf16.msra.mxu1 %v4044_v6  ;;  %v606_v5 = vld [vmem:[%s5297_s23 + $0x6b8] sm:$0xff] }
 0x18b   : > { %2292 = vmatprep.subr.bf16.mxu0 %v4059_v7  ;;  %2333 = vmatprep.subr.bf16.mxu1 %v4061_v8  ;;  %v614_v6 = vld [vmem:[%s5297_s23 + $0x6f8] sm:$0xff]  ;;  %v4170_v7 = vcombine.low %v589_v58, %v597_v60  ;;  %v4172_v8 = vcombine.low %v590_v61, %v598_v3  ;;  %v654_v58 = vrot.slane %v5623_v49, %v653_v50  ;;  %v4650_v61 = vld [vmem:[%s5307_s12 + $0xa8] sm:$0xff]   ;;  %v4651_v3 = vld [vmem:[%s5307_s12 + $0x70] sm:$0xff]  }
 0x18c   : > { %v4189_v10 = vcombine.high %v606_v5, %v614_v6  ;;  %v666_v60 = vrot.slane %v5623_v49, %v665_v51 }
 0x18e   : > { %2293 = vmatpush1.bf16.msra.mxu0 %v4058_v13  ;;  %2334 = vmatpush1.bf16.msra.mxu1 %v4060_v14  ;;  %v622_v13 = vld [vmem:[%s5297_s23 + $0x738] sm:$0xff] }
 0x18f   : > { %2294 = vmatprep.subr.bf16.mxu0 %v4075_v15  ;;  %2335 = vmatprep.subr.bf16.mxu1 %v4077_v16  ;;  %v630_v14 = vld [vmem:[%s5297_s23 + $0x778] sm:$0xff]  ;;  %v4186_v15 = vcombine.low %v605_v2, %v613_v4  ;;  %v4188_v16 = vcombine.low %v606_v5, %v614_v6 }
 0x190   : > { %v4205_v18 = vcombine.high %v622_v13, %v630_v14 }
 0x192   : > { %2295 = vmatpush1.bf16.msra.mxu0 %v4074_v22  ;;  %2336 = vmatpush1.bf16.msra.mxu1 %v4076_v23  ;;  %v638_v22 = vld [vmem:[%s5297_s23 + $0x7b8] sm:$0xff] }
 0x193   : > { %2296 = vmatprep.subr.bf16.mxu0 %v4091_v24  ;;  %2337 = vmatprep.subr.bf16.mxu1 %v4093_v25  ;;  %v646_v23 = vld [vmem:[%s5297_s23 + $0x7f8] sm:$0xff]  ;;  %v4202_v24 = vcombine.low %v621_v11, %v629_v12  ;;  %v4204_v25 = vcombine.low %v622_v13, %v630_v14  ;;  %v4654_v12 = vld [vmem:[%s5307_s12 + $0xb0] sm:$0xff]  }
 0x194   : > { %v4221_v27 = vcombine.high %v638_v22, %v646_v23  ;;  %v4220_v29 = vcombine.low %v638_v22, %v646_v23  ;;  %v4655_v13 = vld [vmem:[%s5307_s12 + $0x78] sm:$0xff]  }
 0x196   : > { %2297 = vmatpush1.bf16.msra.mxu0 %v4090_v30  ;;  %2338 = vmatpush1.bf16.msra.mxu1 %v4092_v31  ;;  %v4627_v30 = vld [vmem:[%s5307_s12 + $0x40] sm:$0xff]  }
 0x197   : > { %2298 = vmatprep.subr.bf16.mxu0 %v4107_v56  ;;  %2339 = vmatprep.subr.bf16.mxu1 %v4109_v59  ;;  %v4628_v31 = vld [vmem:[%s5307_s12 + $0xc0] sm:$0xff]  }
 0x198   : > { %v4629_v56 = vld [vmem:[%s5307_s12] sm:$0xff]  }
 0x199   : > { %v4630_v59 = vld [vmem:[%s5307_s12 + $0x80] sm:$0xff]  }
 0x19a   : > { %2299 = vmatpush1.bf16.msra.mxu0 %v4106_v36  ;;  %2340 = vmatpush1.bf16.msra.mxu1 %v4108_v37  ;;  %v4635_v36 = vld [vmem:[%s5307_s12 + $0x50] sm:$0xff]  }
 0x19b   : > { %2300 = vmatprep.subr.bf16.mxu0 %v4123_v38  ;;  %2341 = vmatprep.subr.bf16.mxu1 %v4125_v39  ;;  %v4636_v37 = vld [vmem:[%s5307_s12 + $0xd0] sm:$0xff]  }
 0x19c   : > { %v4637_v38 = vld [vmem:[%s5307_s12 + $0x10] sm:$0xff]  }
 0x19d   : > { %v4638_v39 = vld [vmem:[%s5307_s12 + $0x90] sm:$0xff]  }
 0x19e   : > { %2301 = vmatpush1.bf16.msra.mxu0 %v4122_v44  ;;  %2342 = vmatpush1.bf16.msra.mxu1 %v4124_v45  ;;  %v4644_v44 = vld [vmem:[%s5307_s12 + $0xe0] sm:$0xff]  }
 0x19f   : > { %2302 = vmatprep.subr.bf16.mxu0 %v4139_v47  ;;  %2343 = vmatprep.subr.bf16.mxu1 %v4141_v48  ;;  %v4645_v45 = vld [vmem:[%s5307_s12 + $0x20] sm:$0xff]   ;;  %v657_v47 = vsub.s32 1, %v5337_v46 }
 0x1a0   : > { %v4646_v48 = vld [vmem:[%s5307_s12 + $0xa0] sm:$0xff]  }
 0x1a2   : > { %2303 = vmatpush1.bf16.msra.mxu0 %v4138_v53  ;;  %2344 = vmatpush1.bf16.msra.mxu1 %v4140_v54  ;;  %v661_v53 = vsub.s32 2, %v5337_v46  ;;  %v4648_v54 = vld [vmem:[%s5307_s12 + $0xe8] sm:$0xff]  }
 0x1a3   : > { %2304 = vmatprep.subr.bf16.mxu0 %v4155_v55  ;;  %2345 = vmatprep.subr.bf16.mxu1 %v4157_v57  ;;  %v658_v55 = vrot.slane %v5623_v49, %v657_v47  ;;  %v4649_v57 = vld [vmem:[%s5307_s12 + $0x28] sm:$0xff]  }
 0x1a6   : > { %2305 = vmatpush1.bf16.msra.mxu0 %v4154_v62  ;;  %2346 = vmatpush1.bf16.msra.mxu1 %v4156_v63  ;;  %v662_v63 = vrot.slane %v5623_v49, %v661_v53 }
 0x1a7   : > { %2306 = vmatprep.subr.bf16.mxu0 %v4171_v0  ;;  %2347 = vmatprep.subr.bf16.mxu1 %v4173_v1  ;;  %v4652_v0 = vld [vmem:[%s5307_s12 + $0xf0] sm:$0xff]  }
 0x1aa   : > { %2307 = vmatpush1.bf16.msra.mxu0 %v4170_v7  ;;  %2348 = vmatpush1.bf16.msra.mxu1 %v4172_v8  ;;  %v4653_v7 = vld [vmem:[%s5307_s12 + $0x30] sm:$0xff]  }
 0x1ab   : > { %2308 = vmatprep.subr.bf16.mxu0 %v4187_v9  ;;  %2349 = vmatprep.subr.bf16.mxu1 %v4189_v10 }
 0x1ae   : > { %2309 = vmatpush1.bf16.msra.mxu0 %v4186_v15  ;;  %2350 = vmatpush1.bf16.msra.mxu1 %v4188_v16 }
 0x1af   : > { %2310 = vmatprep.subr.bf16.mxu0 %v4203_v17  ;;  %2351 = vmatprep.subr.bf16.mxu1 %v4205_v18  ;;  %v4656_v17 = vld [vmem:[%s5307_s12 + $0xf8] sm:$0xff]  }
 0x1b2   : > { %2311 = vmatpush1.bf16.msra.mxu0 %v4202_v24  ;;  %2352 = vmatpush1.bf16.msra.mxu1 %v4204_v25  ;;  %v4658_v24 = vld [vmem:[%s5307_s12 + $0xb8] sm:$0xff]   ;;  %v4659_v25 = vld [vmem:[%s5307_s12 + $0x140] sm:$0xff]  }
 0x1b3   : > { %2312 = vmatprep.subr.bf16.mxu0 %v4219_v26  ;;  %2353 = vmatprep.subr.bf16.mxu1 %v4221_v27  ;;  %v4660_v27 = vld [vmem:[%s5307_s12 + $0x1c0] sm:$0xff]  }
 0x1b6   : > { %2313 = vmatpush1.bf16.msra.mxu0 %v4218_v28  ;;  %2354 = vmatpush1.bf16.msra.mxu1 %v4220_v29  ;;  %v4661_v28 = vld [vmem:[%s5307_s12 + $0x100] sm:$0xff]  }
 0x1b7   : > { %4359 = vmatprep.subr.bf16.mxu0 %v4627_v30  ;;  %4381 = vmatprep.subr.bf16.mxu1 %v4628_v31  ;;  %v4662_v30 = vld [vmem:[%s5307_s12 + $0x180] sm:$0xff]   ;;  %v4663_v31 = vld [vmem:[%s5307_s12 + $0x148] sm:$0xff]  }
 0x1b9   : > { %2315 = vmatmul.mubr.bf16.vlgmr.msra.gmra.mrb[12].mxu0 %v5399_v21  ;;  %2356 = vmatmul.mubr.bf16.vlgmr.msra.gmra.mrb[12].mxu1 %v5399_v21  ;;  %v4639_v21 = vld [vmem:[%s5307_s12 + $0x58] sm:$0xff]  }
 0x1ba   : > { %4360 = vmatpush3.bf16.msra.mxu0 %v4629_v56  ;;  %4382 = vmatpush3.bf16.msra.mxu1 %v4630_v59  ;;  %v4664_v59 = vld [vmem:[%s5307_s12 + $0x1c8] sm:$0xff]  }
 0x1bb   : > { %4361 = vmatprep.subr.bf16.mxu0 %v4631_v32  ;;  %4383 = vmatprep.subr.bf16.mxu1 %v4632_v33  ;;  %v4665_v32 = vld [vmem:[%s5307_s12 + $0x108] sm:$0xff]  }
 0x1bc   : > { %v4666_v33 = vld [vmem:[%s5307_s12 + $0x188] sm:$0xff]  }
 0x1be   : > { %4362 = vmatpush3.bf16.msra.mxu0 %v4633_v34  ;;  %4384 = vmatpush3.bf16.msra.mxu1 %v4634_v35  ;;  %v4667_v34 = vld [vmem:[%s5307_s12 + $0x150] sm:$0xff]  }
 0x1bf   : > { %4363 = vmatprep.subr.bf16.mxu0 %v4635_v36  ;;  %4385 = vmatprep.subr.bf16.mxu1 %v4636_v37  ;;  %v4668_v35 = vld [vmem:[%s5307_s12 + $0x1d0] sm:$0xff]  }
 0x1c0   : > { %v4669_v36 = vld [vmem:[%s5307_s12 + $0x110] sm:$0xff]  }
 0x1c1   : > { %v4670_v37 = vld [vmem:[%s5307_s12 + $0x190] sm:$0xff]  }
 0x1c2   : > { %4364 = vmatpush3.bf16.msra.mxu0 %v4637_v38  ;;  %4386 = vmatpush3.bf16.msra.mxu1 %v4638_v39  ;;  %v4671_v38 = vld [vmem:[%s5307_s12 + $0x158] sm:$0xff]  }
 0x1c3   : > { %4365 = vmatprep.subr.bf16.mxu0 %v4639_v21  ;;  %4387 = vmatprep.subr.bf16.mxu1 %v4640_v40  ;;  %v4672_v39 = vld [vmem:[%s5307_s12 + $0x1d8] sm:$0xff]  }
 0x1c4   : > { %v4673_v21 = vld [vmem:[%s5307_s12 + $0x118] sm:$0xff]  }
 0x1c5   : > { %v4674_v40 = vld [vmem:[%s5307_s12 + $0x198] sm:$0xff]  }
 0x1c6   : > { %4366 = vmatpush3.bf16.msra.mxu0 %v4641_v41  ;;  %4388 = vmatpush3.bf16.msra.mxu1 %v4642_v42  ;;  %v4675_v41 = vld [vmem:[%s5307_s12 + $0x160] sm:$0xff]  }
 0x1c7   : > { %4367 = vmatprep.subr.bf16.mxu0 %v4643_v43  ;;  %4389 = vmatprep.subr.bf16.mxu1 %v4644_v44  ;;  %v4676_v42 = vld [vmem:[%s5307_s12 + $0x1e0] sm:$0xff]  }
 0x1c8   : > { %v4677_v43 = vld [vmem:[%s5307_s12 + $0x120] sm:$0xff]  }
 0x1c9   : > { %v4678_v44 = vld [vmem:[%s5307_s12 + $0x1a0] sm:$0xff]  }
 0x1ca   : > { %4368 = vmatpush3.bf16.msra.mxu0 %v4645_v45  ;;  %4390 = vmatpush3.bf16.msra.mxu1 %v4646_v48  ;;  %v4679_v45 = vld [vmem:[%s5307_s12 + $0x168] sm:$0xff]  }
 0x1cb   : > { %4369 = vmatprep.subr.bf16.mxu0 %v4647_v52  ;;  %4391 = vmatprep.subr.bf16.mxu1 %v4648_v54  ;;  %v4680_v48 = vld [vmem:[%s5307_s12 + $0x1e8] sm:$0xff]  }
 0x1cc   : > { %v2070_v62 = vpop.f32.mrb[0].mxu0  ;;  %v2111_v1 = vpop.f32.mrb[0].mxu1  ;;  %v4681_v52 = vld [vmem:[%s5307_s12 + $0x128] sm:$0xff]  }
 0x1cd   : > { %v2072_v2 = vpop.f32.mrb[1].mxu0  ;;  %v2113_v5 = vpop.f32.mrb[1].mxu1  ;;  %v2071_v8 = vadd.f32 %v2070_v62, %v654_v58  ;;  %v2112_v14 = vadd.f32 %v2111_v1, %v662_v63  ;;  %v4682_v54 = vld [vmem:[%s5307_s12 + $0x1a8] sm:$0xff]   ;;  %v4685_v58 = vld [vmem:[%s5307_s12 + $0x130] sm:$0xff]   ;;  %v4689_v62 = vld [vmem:[%s5307_s12 + $0x138] sm:$0xff]  }
 0x1ce   : > { %v2073_v4 = vadd.f32 %v2072_v2, %v658_v55  ;;  %v2074_v6 = vpop.f32.mrb[2].mxu0  ;;  %4370 = vmatpush3.bf16.msra.mxu0 %v4649_v57  ;;  %v2114_v9 = vadd.f32 %v2113_v5, %v666_v60  ;;  %v2115_v10 = vpop.f32.mrb[2].mxu1  ;;  %4392 = vmatpush3.bf16.msra.mxu1 %v4650_v61  ;;  %v4683_v55 = vld [vmem:[%s5307_s12 + $0x170] sm:$0xff]   ;;  %v4687_v61 = vld [vmem:[%s5307_s12 + $0x178] sm:$0xff]   ;;  %v4692_v1 = vld [vmem:[%s5307_s12 + $0x2c0] sm:$0xff]   ;;  %v669_v2 = vsub.s32 4, %v5337_v46 }
 0x1cf   : > { %v2075_v11 = vpop.f32.mrb[3].mxu0  ;;  %4371 = vmatprep.subr.bf16.mxu0 %v4651_v3  ;;  %v2116_v16 = vpop.f32.mrb[3].mxu1  ;;  %4393 = vmatprep.subr.bf16.mxu1 %v4652_v0  ;;  %v2364_v22 = vmax.f32 %v2071_v8, 0.0  ;;  %v2366_v26 = vmax.f32 %v2112_v14, 0.0  ;;  %v4684_v57 = vld [vmem:[%s5307_s12 + $0x1f0] sm:$0xff]   ;;  %v4688_v3 = vld [vmem:[%s5307_s12 + $0x1f8] sm:$0xff]  }
 0x1d0   : > { %v2365_v15 = vmax.f32 %v2073_v4, 0.0  ;;  %v2367_v18 = vmax.f32 %v2114_v9, 0.0  ;;  %v4686_v60 = vld [vmem:[%s5307_s12 + $0x1b0] sm:$0xff]   ;;  %v4690_v63 = vld [vmem:[%s5307_s12 + $0x1b8] sm:$0xff]   ;;  %v4691_v0 = vld [vmem:[%s5307_s12 + $0x240] sm:$0xff]   ;;  %v677_v4 = vsub.s32 6, %v5337_v46 }
 0x1d1   : > { %v2380_v29 = vpack.c.bf16 %v2364_v22, %v2364_v22  ;;  %v2382_v56 = vpack.c.bf16 %v2366_v26, %v2366_v26  ;;  %v673_v5 = vsub.s32 5, %v5337_v46  ;;  %v681_v6 = vsub.s32 7, %v5337_v46 }
 0x1d2   : > { %v2381_v19 = vpack.c.bf16 %v2365_v15, %v2365_v15  ;;  %4372 = vmatpush3.bf16.msra.mxu0 %v4653_v7  ;;  %v2383_v23 = vpack.c.bf16 %v2367_v18, %v2367_v18  ;;  %4394 = vmatpush3.bf16.msra.mxu1 %v4654_v12  ;;  %v670_v7 = vrot.slane %v5623_v49, %v669_v2 }
 0x1d3   : > { %4373 = vmatprep.subr.bf16.mxu0 %v4655_v13  ;;  %4395 = vmatprep.subr.bf16.mxu1 %v4656_v17  ;;  %v678_v8 = vrot.slane %v5623_v49, %v677_v4  ;;  %v674_v9 = vrot.slane %v5623_v49, %v673_v5  ;;  %v682_v10 = vrot.slane %v5623_v49, %v681_v6 }
 0x1d4   : > { %3452 = vmatprep.mubr.bf16.mxu0 %v2381_v19  ;;  %3492 = vmatprep.mubr.bf16.mxu1 %v2383_v23 }
 0x1d6   : > { %4374 = vmatpush3.bf16.msra.mxu0 %v4657_v20  ;;  %4396 = vmatpush3.bf16.msra.mxu1 %v4658_v24 }
 0x1d7   : > { %4403 = vmatprep.subr.bf16.mxu0 %v4659_v25  ;;  %4425 = vmatprep.subr.bf16.mxu1 %v4660_v27 }
 0x1d9   : > { %3453 = vmatmul.mubr.bf16.vlgmr.msra.gmra.mrb[16].mxu0 %v2380_v29  ;;  %3493 = vmatmul.mubr.bf16.vlgmr.msra.gmra.mrb[16].mxu1 %v2382_v56  ;;  %v4694_v56 = vld [vmem:[%s5307_s12 + $0x280] sm:$0xff]  }
 0x1da   : > { %4404 = vmatpush3.bf16.msra.mxu0 %v4661_v28  ;;  %4426 = vmatpush3.bf16.msra.mxu1 %v4662_v30  ;;  %v4693_v30 = vld [vmem:[%s5307_s12 + $0x200] sm:$0xff]  }
 0x1db   : > { %4405 = vmatprep.subr.bf16.mxu0 %v4663_v31  ;;  %4427 = vmatprep.subr.bf16.mxu1 %v4664_v59  ;;  %v4695_v59 = vld [vmem:[%s5307_s12 + $0x248] sm:$0xff]  }
 0x1de   : > { %4406 = vmatpush3.bf16.msra.mxu0 %v4665_v32  ;;  %4428 = vmatpush3.bf16.msra.mxu1 %v4666_v33  ;;  %v4696_v32 = vld [vmem:[%s5307_s12 + $0x2c8] sm:$0xff]  }
 0x1df   : > { %4407 = vmatprep.subr.bf16.mxu0 %v4667_v34  ;;  %4429 = vmatprep.subr.bf16.mxu1 %v4668_v35  ;;  %v4697_v33 = vld [vmem:[%s5307_s12 + $0x208] sm:$0xff]   ;;  %v4699_v35 = vld [vmem:[%s5307_s12 + $0x250] sm:$0xff]  }
 0x1e0   : > { %v4698_v34 = vld [vmem:[%s5307_s12 + $0x288] sm:$0xff]  }
 0x1e2   : > { %4408 = vmatpush3.bf16.msra.mxu0 %v4669_v36  ;;  %4430 = vmatpush3.bf16.msra.mxu1 %v4670_v37  ;;  %v4700_v36 = vld [vmem:[%s5307_s12 + $0x2d0] sm:$0xff]  }
 0x1e3   : > { %4409 = vmatprep.subr.bf16.mxu0 %v4671_v38  ;;  %4431 = vmatprep.subr.bf16.mxu1 %v4672_v39  ;;  %v4701_v37 = vld [vmem:[%s5307_s12 + $0x210] sm:$0xff]   ;;  %v4703_v39 = vld [vmem:[%s5307_s12 + $0x258] sm:$0xff]  }
 0x1e4   : > { %v4702_v38 = vld [vmem:[%s5307_s12 + $0x290] sm:$0xff]  }
 0x1e6   : > { %4410 = vmatpush3.bf16.msra.mxu0 %v4673_v21  ;;  %4432 = vmatpush3.bf16.msra.mxu1 %v4674_v40  ;;  %v4704_v21 = vld [vmem:[%s5307_s12 + $0x2d8] sm:$0xff]  }
 0x1e7   : > { %4411 = vmatprep.subr.bf16.mxu0 %v4675_v41  ;;  %4433 = vmatprep.subr.bf16.mxu1 %v4676_v42  ;;  %v4705_v40 = vld [vmem:[%s5307_s12 + $0x218] sm:$0xff]   ;;  %v4707_v42 = vld [vmem:[%s5307_s12 + $0x260] sm:$0xff]  }
 0x1e8   : > { %v4706_v41 = vld [vmem:[%s5307_s12 + $0x298] sm:$0xff]  }
 0x1ea   : > { %4412 = vmatpush3.bf16.msra.mxu0 %v4677_v43  ;;  %4434 = vmatpush3.bf16.msra.mxu1 %v4678_v44  ;;  %v4708_v43 = vld [vmem:[%s5307_s12 + $0x2e0] sm:$0xff]  }
 0x1eb   : > { %4413 = vmatprep.subr.bf16.mxu0 %v4679_v45  ;;  %4435 = vmatprep.subr.bf16.mxu1 %v4680_v48  ;;  %v4709_v44 = vld [vmem:[%s5307_s12 + $0x220] sm:$0xff]   ;;  %v4711_v48 = vld [vmem:[%s5307_s12 + $0x268] sm:$0xff]  }
 0x1ec   : > { %v4710_v45 = vld [vmem:[%s5307_s12 + $0x2a0] sm:$0xff]  }
 0x1ee   : > { %4414 = vmatpush3.bf16.msra.mxu0 %v4681_v52  ;;  %4436 = vmatpush3.bf16.msra.mxu1 %v4682_v54  ;;  %v4712_v52 = vld [vmem:[%s5307_s12 + $0x2e8] sm:$0xff]  }
 0x1ef   : > { %4415 = vmatprep.subr.bf16.mxu0 %v4683_v55  ;;  %4437 = vmatprep.subr.bf16.mxu1 %v4684_v57  ;;  %v4713_v54 = vld [vmem:[%s5307_s12 + $0x228] sm:$0xff]   ;;  %v4715_v57 = vld [vmem:[%s5307_s12 + $0x270] sm:$0xff]  }
 0x1f0   : > { %v4714_v55 = vld [vmem:[%s5307_s12 + $0x2a8] sm:$0xff]  }
 0x1f2   : > { %4416 = vmatpush3.bf16.msra.mxu0 %v4685_v58  ;;  %4438 = vmatpush3.bf16.msra.mxu1 %v4686_v60  ;;  %v4716_v58 = vld [vmem:[%s5307_s12 + $0x2f0] sm:$0xff]  }
 0x1f3   : > { %4417 = vmatprep.subr.bf16.mxu0 %v4687_v61  ;;  %4439 = vmatprep.subr.bf16.mxu1 %v4688_v3  ;;  %v4717_v60 = vld [vmem:[%s5307_s12 + $0x230] sm:$0xff]   ;;  %v4719_v3 = vld [vmem:[%s5307_s12 + $0x278] sm:$0xff]  }
 0x1f4   : > { %v4718_v61 = vld [vmem:[%s5307_s12 + $0x2b0] sm:$0xff]  }
 0x1f6   : > { %4418 = vmatpush3.bf16.msra.mxu0 %v4689_v62  ;;  %4440 = vmatpush3.bf16.msra.mxu1 %v4690_v63  ;;  %v4720_v62 = vld [vmem:[%s5307_s12 + $0x2f8] sm:$0xff]  }
 0x1f7   : > { %4447 = vmatprep.subr.bf16.mxu0 %v4691_v0  ;;  %4469 = vmatprep.subr.bf16.mxu1 %v4692_v1  ;;  %v4721_v63 = vld [vmem:[%s5307_s12 + $0x238] sm:$0xff]   ;;  %v4723_v1 = vld [vmem:[%s5307_s12 + $0x340] sm:$0xff]  }
 0x1f8   : > { %v4722_v0 = vld [vmem:[%s5307_s12 + $0x2b8] sm:$0xff]  }
 0x20c   : > { %v2152_v11 = vpop.f32.mrb[4].mxu0  ;;  %v2193_v13 = vpop.f32.mrb[4].mxu1 }
 0x20d   : > { %v2153_v12 = vadd.f32 %v2152_v11, %v670_v7  ;;  %v2154_v14 = vpop.f32.mrb[5].mxu0  ;;  %v2194_v15 = vadd.f32 %v2193_v13, %v678_v8  ;;  %v2195_v17 = vpop.f32.mrb[5].mxu1  ;;  %v4724_v7 = vld [vmem:[%s5307_s12 + $0x3c0] sm:$0xff]   ;;  %v5735_v8 = vld [vmem:[%s5305_s6 + $0x8] sm:$0xff] }
 0x20e   : > { %v2155_v16 = vadd.f32 %v2154_v14, %v674_v9  ;;  %v2156_v18 = vpop.f32.mrb[6].mxu0  ;;  %v2196_v20 = vadd.f32 %v2195_v17, %v682_v10  ;;  %v2197_v22 = vpop.f32.mrb[6].mxu1  ;;  %v686_v9 = vrot.slane %v5735_v8, %v653_v50  ;;  %v694_v10 = vrot.slane %v5735_v8, %v661_v53 }
 0x20f   : > { %v2368_v19 = vmax.f32 %v2153_v12, 0.0  ;;  %v2157_v23 = vpop.f32.mrb[7].mxu0  ;;  %v2370_v24 = vmax.f32 %v2194_v15, 0.0  ;;  %v2198_v49 = vpop.f32.mrb[7].mxu1  ;;  %v690_v11 = vrot.slane %v5735_v8, %v657_v47  ;;  %v698_v12 = vrot.slane %v5735_v8, %v665_v51 }
 0x210   : > { %v2369_v25 = vmax.f32 %v2155_v16, 0.0  ;;  %v2371_v27 = vmax.f32 %v2196_v20, 0.0 }
 0x211   : > { %v2384_v26 = vpack.c.bf16 %v2368_v19, %v2368_v19  ;;  %v2386_v28 = vpack.c.bf16 %v2370_v24, %v2370_v24 }
 0x212   : > { %v2385_v29 = vpack.c.bf16 %v2369_v25, %v2369_v25  ;;  %v2387_v31 = vpack.c.bf16 %v2371_v27, %v2371_v27 }
 0x214   : > { %3532 = vmatprep.mubr.bf16.mxu0 %v2385_v29  ;;  %3572 = vmatprep.mubr.bf16.mxu1 %v2387_v31  ;;  %v4727_v31 = vld [vmem:[%s5307_s12 + $0x348] sm:$0xff]  }
 0x215   : > { %3533 = vmatmul.mubr.bf16.vlgmr.msra.gmra.mrb[20].mxu0 %v2384_v26  ;;  %3573 = vmatmul.mubr.bf16.vlgmr.msra.gmra.mrb[20].mxu1 %v2386_v28  ;;  %v4725_v28 = vld [vmem:[%s5307_s12 + $0x300] sm:$0xff]  }
 0x216   : > { %4448 = vmatpush3.bf16.msra.mxu0 %v4693_v30  ;;  %4470 = vmatpush3.bf16.msra.mxu1 %v4694_v56  ;;  %v4726_v30 = vld [vmem:[%s5307_s12 + $0x380] sm:$0xff]   ;;  %v4728_v56 = vld [vmem:[%s5307_s12 + $0x3c8] sm:$0xff]  }
 0x217   : > { %4449 = vmatprep.subr.bf16.mxu0 %v4695_v59  ;;  %4471 = vmatprep.subr.bf16.mxu1 %v4696_v32  ;;  %v4729_v59 = vld [vmem:[%s5307_s12 + $0x308] sm:$0xff]  }
 0x218   : > { %v4730_v32 = vld [vmem:[%s5307_s12 + $0x388] sm:$0xff]  }
 0x21a   : > { %4450 = vmatpush3.bf16.msra.mxu0 %v4697_v33  ;;  %4472 = vmatpush3.bf16.msra.mxu1 %v4698_v34  ;;  %v4731_v33 = vld [vmem:[%s5307_s12 + $0x350] sm:$0xff]  }
 0x21b   : > { %4451 = vmatprep.subr.bf16.mxu0 %v4699_v35  ;;  %4473 = vmatprep.subr.bf16.mxu1 %v4700_v36  ;;  %v4732_v34 = vld [vmem:[%s5307_s12 + $0x3d0] sm:$0xff]  }
 0x21c   : > { %v4733_v35 = vld [vmem:[%s5307_s12 + $0x310] sm:$0xff]  }
 0x21d   : > { %v4734_v36 = vld [vmem:[%s5307_s12 + $0x390] sm:$0xff]  }
 0x21e   : > { %4452 = vmatpush3.bf16.msra.mxu0 %v4701_v37  ;;  %4474 = vmatpush3.bf16.msra.mxu1 %v4702_v38  ;;  %v4735_v37 = vld [vmem:[%s5307_s12 + $0x358] sm:$0xff]  }
 0x21f   : > { %4453 = vmatprep.subr.bf16.mxu0 %v4703_v39  ;;  %4475 = vmatprep.subr.bf16.mxu1 %v4704_v21  ;;  %v4736_v38 = vld [vmem:[%s5307_s12 + $0x3d8] sm:$0xff]  }
 0x220   : > { %v4737_v39 = vld [vmem:[%s5307_s12 + $0x318] sm:$0xff]  }
 0x221   : > { %v4738_v21 = vld [vmem:[%s5307_s12 + $0x398] sm:$0xff]  }
 0x222   : > { %4454 = vmatpush3.bf16.msra.mxu0 %v4705_v40  ;;  %4476 = vmatpush3.bf16.msra.mxu1 %v4706_v41  ;;  %v4739_v40 = vld [vmem:[%s5307_s12 + $0x360] sm:$0xff]  }
 0x223   : > { %4455 = vmatprep.subr.bf16.mxu0 %v4707_v42  ;;  %4477 = vmatprep.subr.bf16.mxu1 %v4708_v43  ;;  %v4740_v41 = vld [vmem:[%s5307_s12 + $0x3e0] sm:$0xff]  }
 0x224   : > { %v4741_v42 = vld [vmem:[%s5307_s12 + $0x320] sm:$0xff]  }
 0x225   : > { %v4742_v43 = vld [vmem:[%s5307_s12 + $0x3a0] sm:$0xff]  }
 0x226   : > { %4456 = vmatpush3.bf16.msra.mxu0 %v4709_v44  ;;  %4478 = vmatpush3.bf16.msra.mxu1 %v4710_v45  ;;  %v4743_v44 = vld [vmem:[%s5307_s12 + $0x368] sm:$0xff]  }
 0x227   : > { %4457 = vmatprep.subr.bf16.mxu0 %v4711_v48  ;;  %4479 = vmatprep.subr.bf16.mxu1 %v4712_v52  ;;  %v4744_v45 = vld [vmem:[%s5307_s12 + $0x3e8] sm:$0xff]  }
 0x228   : > { %v4745_v48 = vld [vmem:[%s5307_s12 + $0x328] sm:$0xff]  }
 0x229   : > { %v4746_v52 = vld [vmem:[%s5307_s12 + $0x3a8] sm:$0xff]  }
 0x22a   : > { %4458 = vmatpush3.bf16.msra.mxu0 %v4713_v54  ;;  %4480 = vmatpush3.bf16.msra.mxu1 %v4714_v55  ;;  %v4747_v54 = vld [vmem:[%s5307_s12 + $0x370] sm:$0xff]  }
 0x22b   : > { %4459 = vmatprep.subr.bf16.mxu0 %v4715_v57  ;;  %4481 = vmatprep.subr.bf16.mxu1 %v4716_v58  ;;  %v4748_v55 = vld [vmem:[%s5307_s12 + $0x3f0] sm:$0xff]  }
 0x22c   : > { %v4749_v57 = vld [vmem:[%s5307_s12 + $0x330] sm:$0xff]  }
 0x22d   : > { %v4750_v58 = vld [vmem:[%s5307_s12 + $0x3b0] sm:$0xff]  }
 0x22e   : > { %4460 = vmatpush3.bf16.msra.mxu0 %v4717_v60  ;;  %4482 = vmatpush3.bf16.msra.mxu1 %v4718_v61  ;;  %v4751_v60 = vld [vmem:[%s5307_s12 + $0x378] sm:$0xff]  }
 0x22f   : > { %4461 = vmatprep.subr.bf16.mxu0 %v4719_v3  ;;  %4483 = vmatprep.subr.bf16.mxu1 %v4720_v62  ;;  %v4752_v61 = vld [vmem:[%s5307_s12 + $0x3f8] sm:$0xff]  }
 0x230   : > { %v4753_v3 = vld [vmem:[%s5307_s12 + $0x338] sm:$0xff]  }
 0x231   : > { %v4754_v62 = vld [vmem:[%s5307_s12 + $0x3b8] sm:$0xff]  }
 0x232   : > { %4462 = vmatpush3.bf16.msra.mxu0 %v4721_v63  ;;  %4484 = vmatpush3.bf16.msra.mxu1 %v4722_v0  ;;  %v702_v63 = vrot.slane %v5735_v8, %v669_v2  ;;  %v710_v0 = vrot.slane %v5735_v8, %v677_v4 }
 0x233   : > { %4491 = vmatprep.subr.bf16.mxu0 %v4723_v1  ;;  %4513 = vmatprep.subr.bf16.mxu1 %v4724_v7  ;;  %v706_v1 = vrot.slane %v5735_v8, %v673_v5  ;;  %v714_v7 = vrot.slane %v5735_v8, %v681_v6 }
 0x24c   : > { %v2234_v13 = vpop.f32.mrb[8].mxu0  ;;  %v2275_v15 = vpop.f32.mrb[8].mxu1 }
 0x24d   : > { %v2235_v14 = vadd.f32 %v2234_v13, %v686_v9  ;;  %v2236_v16 = vpop.f32.mrb[9].mxu0  ;;  %v2276_v17 = vadd.f32 %v2275_v15, %v694_v10  ;;  %v2277_v50 = vpop.f32.mrb[9].mxu1 }
 0x24e   : > { %v2237_v18 = vadd.f32 %v2236_v16, %v690_v11  ;;  %v2238_v19 = vpop.f32.mrb[10].mxu0  ;;  %v2278_v20 = vadd.f32 %v2277_v50, %v698_v12  ;;  %v2279_v22 = vpop.f32.mrb[10].mxu1 }
 0x24f   : > { %v2372_v53 = vmax.f32 %v2235_v14, 0.0  ;;  %v2239_v47 = vpop.f32.mrb[11].mxu0  ;;  %v2374_v23 = vmax.f32 %v2276_v17, 0.0  ;;  %v2280_v51 = vpop.f32.mrb[11].mxu1 }
 0x250   : > { %v2373_v24 = vmax.f32 %v2237_v18, 0.0  ;;  %v2375_v49 = vmax.f32 %v2278_v20, 0.0 }
 0x251   : > { %v2388_v25 = vpack.c.bf16 %v2372_v53, %v2372_v53  ;;  %v2390_v26 = vpack.c.bf16 %v2374_v23, %v2374_v23 }
 0x252   : > { %v2389_v27 = vpack.c.bf16 %v2373_v24, %v2373_v24  ;;  %v2391_v29 = vpack.c.bf16 %v2375_v49, %v2375_v49 }
 0x254   : > { %3612 = vmatprep.mubr.bf16.mxu0 %v2389_v27  ;;  %3652 = vmatprep.mubr.bf16.mxu1 %v2391_v29 }
 0x255   : > { %3613 = vmatmul.mubr.bf16.vlgmr.msra.gmra.mrb[24].mxu0 %v2388_v25  ;;  %3653 = vmatmul.mubr.bf16.vlgmr.msra.gmra.mrb[24].mxu1 %v2390_v26 }
 0x256   : > { %4492 = vmatpush3.bf16.msra.mxu0 %v4725_v28  ;;  %4514 = vmatpush3.bf16.msra.mxu1 %v4726_v30 }
 0x257   : > { %4493 = vmatprep.subr.bf16.mxu0 %v4727_v31  ;;  %4515 = vmatprep.subr.bf16.mxu1 %v4728_v56 }
 0x25a   : > { %4494 = vmatpush3.bf16.msra.mxu0 %v4729_v59  ;;  %4516 = vmatpush3.bf16.msra.mxu1 %v4730_v32 }
 0x25b   : > { %4495 = vmatprep.subr.bf16.mxu0 %v4731_v33  ;;  %4517 = vmatprep.subr.bf16.mxu1 %v4732_v34 }
 0x25e   : > { %4496 = vmatpush3.bf16.msra.mxu0 %v4733_v35  ;;  %4518 = vmatpush3.bf16.msra.mxu1 %v4734_v36 }
 0x25f   : > { %4497 = vmatprep.subr.bf16.mxu0 %v4735_v37  ;;  %4519 = vmatprep.subr.bf16.mxu1 %v4736_v38 }
 0x262   : > { %4498 = vmatpush3.bf16.msra.mxu0 %v4737_v39  ;;  %4520 = vmatpush3.bf16.msra.mxu1 %v4738_v21 }
 0x263   : > { %4499 = vmatprep.subr.bf16.mxu0 %v4739_v40  ;;  %4521 = vmatprep.subr.bf16.mxu1 %v4740_v41 }
 0x266   : > { %4500 = vmatpush3.bf16.msra.mxu0 %v4741_v42  ;;  %4522 = vmatpush3.bf16.msra.mxu1 %v4742_v43 }
 0x267   : > { %4501 = vmatprep.subr.bf16.mxu0 %v4743_v44  ;;  %4523 = vmatprep.subr.bf16.mxu1 %v4744_v45 }
 0x26a   : > { %4502 = vmatpush3.bf16.msra.mxu0 %v4745_v48  ;;  %4524 = vmatpush3.bf16.msra.mxu1 %v4746_v52 }
 0x26b   : > { %4503 = vmatprep.subr.bf16.mxu0 %v4747_v54  ;;  %4525 = vmatprep.subr.bf16.mxu1 %v4748_v55 }
 0x26e   : > { %4504 = vmatpush3.bf16.msra.mxu0 %v4749_v57  ;;  %4526 = vmatpush3.bf16.msra.mxu1 %v4750_v58 }
 0x26f   : > { %4505 = vmatprep.subr.bf16.mxu0 %v4751_v60  ;;  %4527 = vmatprep.subr.bf16.mxu1 %v4752_v61 }
 0x272   : > { %4506 = vmatpush3.bf16.msra.mxu0 %v4753_v3  ;;  %4528 = vmatpush3.bf16.msra.mxu1 %v4754_v62 }
 0x28c   : > { %v2316_v9 = vpop.f32.mrb[12].mxu0  ;;  %v2357_v11 = vpop.f32.mrb[12].mxu1 }
 0x28d   : > { %v2317_v10 = vadd.f32 %v2316_v9, %v702_v63  ;;  %v2318_v12 = vpop.f32.mrb[13].mxu0  ;;  %v2358_v13 = vadd.f32 %v2357_v11, %v710_v0  ;;  %v2359_v15 = vpop.f32.mrb[13].mxu1 }
 0x28e   : > { %v2319_v14 = vadd.f32 %v2318_v12, %v706_v1  ;;  %v2320_v2 = vpop.f32.mrb[14].mxu0  ;;  %v2360_v17 = vadd.f32 %v2359_v15, %v714_v7  ;;  %v2361_v18 = vpop.f32.mrb[14].mxu1  ;;  %v4350_v12 = vld [vmem:[%s345_s29] ss:$0 sm:$0xff] }
 0x28f   : > { %v2376_v16 = vmax.f32 %v2317_v10, 0.0  ;;  %v2321_v4 = vpop.f32.mrb[15].mxu0  ;;  %v2378_v50 = vmax.f32 %v2358_v13, 0.0  ;;  %v2362_v53 = vpop.f32.mrb[15].mxu1 }
 0x290   : > { %v2377_v19 = vmax.f32 %v2319_v14, 0.0  ;;  %v2379_v5 = vmax.f32 %v2360_v17, 0.0 }
 0x291   : > { %v2394_v20 = vpack.c.bf16 %v2378_v50, %v2378_v50  ;;  %v2392_v22 = vpack.c.bf16 %v2376_v16, %v2376_v16 }
 0x292   : > { %v2393_v46 = vpack.c.bf16 %v2377_v19, %v2377_v19  ;;  %v2395_v6 = vpack.c.bf16 %v2379_v5, %v2379_v5 }
 0x294   : > { %3692 = vmatprep.mubr.bf16.mxu0 %v2393_v46  ;;  %3732 = vmatprep.mubr.bf16.mxu1 %v2395_v6 }
 0x295   : > { %3693 = vmatmul.mubr.bf16.vlgmr.msra.gmra.mrb[28].mxu0 %v2392_v22  ;;  %3733 = vmatmul.mubr.bf16.vlgmr.msra.gmra.mrb[28].mxu1 %v2394_v20 }
 0x2ac   : > { %v4375_v8 = vpop.f32.mrb[16].mxu0  ;;  %v4397_v47 = vpop.f32.mrb[16].mxu1 }
 0x2ad   : > { %v4376_v23 = vpop.f32.mrb[17].mxu0  ;;  %v4398_v51 = vpop.f32.mrb[17].mxu1 }
 0x2ae   : > { %v4377_v24 = vadd.f32 %v4376_v23, %v4375_v8  ;;  %v4378_v25 = vpop.f32.mrb[18].mxu0  ;;  %v4399_v49 = vadd.f32 %v4398_v51, %v4397_v47  ;;  %v4400_v26 = vpop.f32.mrb[18].mxu1 }
 0x2af   : > { %v4379_v27 = vpop.f32.mrb[19].mxu0  ;;  %v4401_v28 = vpop.f32.mrb[19].mxu1 }
 0x2b0   : > { %v3495_v29 = vadd.f32 %v4399_v49, %v4377_v24 }
 0x2e8   : > { %v4419_v30 = vpop.f32.mrb[20].mxu0  ;;  %v4441_v31 = vpop.f32.mrb[20].mxu1 }
 0x2e9   : > { %v4420_v56 = vpop.f32.mrb[21].mxu0  ;;  %v4442_v32 = vpop.f32.mrb[21].mxu1 }
 0x2ea   : > { %v4421_v59 = vadd.f32 %v4420_v56, %v4419_v30  ;;  %v4422_v33 = vpop.f32.mrb[22].mxu0  ;;  %v4443_v34 = vadd.f32 %v4442_v32, %v4441_v31  ;;  %v4444_v35 = vpop.f32.mrb[22].mxu1 }
 0x2eb   : > { %v4423_v36 = vpop.f32.mrb[23].mxu0  ;;  %v4445_v38 = vpop.f32.mrb[23].mxu1 }
 0x2ec   : > { %v3535_v37 = vadd.f32 %v4421_v59, %v3495_v29 }
 0x2ee   : > { %v3575_v39 = vadd.f32 %v4443_v34, %v3535_v37 }
 0x328   : > { %v4463_v21 = vpop.f32.mrb[24].mxu0  ;;  %v4485_v40 = vpop.f32.mrb[24].mxu1 }
 0x329   : > { %v4464_v41 = vpop.f32.mrb[25].mxu0  ;;  %v4486_v43 = vpop.f32.mrb[25].mxu1 }
 0x32a   : > { %v4465_v42 = vadd.f32 %v4464_v41, %v4463_v21  ;;  %v4466_v44 = vpop.f32.mrb[26].mxu0  ;;  %v4487_v45 = vadd.f32 %v4486_v43, %v4485_v40  ;;  %v4488_v48 = vpop.f32.mrb[26].mxu1 }
 0x32b   : > { %v4467_v52 = vpop.f32.mrb[27].mxu0  ;;  %v4489_v55 = vpop.f32.mrb[27].mxu1 }
 0x32c   : > { %v3615_v54 = vadd.f32 %v4465_v42, %v3575_v39 }
 0x32e   : > { %v3655_v57 = vadd.f32 %v4487_v45, %v3615_v54 }
 0x368   : > { %v4507_v58 = vpop.f32.mrb[28].mxu0  ;;  %v4529_v60 = vpop.f32.mrb[28].mxu1 }
 0x369   : > { %v4508_v61 = vpop.f32.mrb[29].mxu0  ;;  %v4530_v62 = vpop.f32.mrb[29].mxu1 }
 0x36a   : > { %v4509_v3 = vadd.f32 %v4508_v61, %v4507_v58  ;;  %v4510_v63 = vpop.f32.mrb[30].mxu0  ;;  %v4531_v0 = vadd.f32 %v4530_v62, %v4529_v60  ;;  %v4532_v1 = vpop.f32.mrb[30].mxu1 }
 0x36b   : > { %v4511_v7 = vpop.f32.mrb[31].mxu0  ;;  %v4533_v10 = vpop.f32.mrb[31].mxu1 }
 0x36c   : > { %v3695_v9 = vadd.f32 %v4509_v3, %v3655_v57 }
 0x36e   : > { %v3735_v11 = vadd.f32 %v4531_v0, %v3695_v9 }
 0x370   : > { %3744 = vst [vmem:[%s385_s27] sm:$0x3] %v3735_v11 }
 0x377   : > { %v3755_v13 = vld [vmem:[%s385_s27] sm:$0x3] }
 0x378   : > { %v3763_v14 = vadd.f32 %v4350_v12, %v3755_v13 }
 0x37a   : > { %v4351_v15 = vmul.f32 -1.442695, %v3763_v14 }
 0x37c   : > { %4755 = vpow2.f32 %v4351_v15 }
 0x386   : > { %v4756_v2 = vpop.eup %4755 }
 0x387   : > { %v3767_v16 = vadd.f32 1.0, %v4756_v2 }
 0x389   : > { %4757 = vrcp.f32 %v3767_v16 }
 0x393   : > { %v4758_v17 = vpop.eup %4757 }
 0x394   : > { %3770 = vst [vmem:[%s385_s27] sm:$0x3] %v4758_v17 }
 0x395   : > { %4920 = shalt.err (!%p4917_p10)
}
 0x396   : > { %s4921_s15 = scalar_lea.hbm %s5797_s26, 32  ;;  %s4925_s30 = scalar_lea.hbm %s5851_s5, 64 }
 0x397   : > { %p4922_p0 = scmp.ne.s32.totalorder %s5797_s26, %s4921_s15  ;;  %p4926_p4 = scmp.lt.u32.totalorder %s5797_s26, %s5851_s5 }
 0x398   : > { %p4927_p11 = scmp.lt.u32.totalorder %s4925_s30, %s4921_s15  ;;  %p4929_p12 = scmp.lt.u32.totalorder %s4921_s15, %s5797_s26 }
 0x399   : > { %p4923_p8 = pnand %p4922_p0, %p5890_p3 }
 0x39a   : > { %p4928_p6 = por %p4927_p11, %p4926_p4 }
 0x39b   : > { %p4924_p13 = pneg %p4923_p8 }
 0x39c   : > { %p4930_p2 = por %p4929_p12, %p4928_p6 }
 0x39e   : > { %p4931_p5 = pnand %p4930_p2, %p4924_p13 }
 0x3a0   : > { %4934 = shalt.err (!%p4931_p5)
}
 0x3a1   : > { %4547 = dma.vmem_to_hbm [thread:$0]  (%p5890_p3), %s5799_s24, 32, %s5797_s26, %s3772_s28  }
 0x3a2 PF: > { %s5891_s8 = sld [smem:[#allocation20_spill]]  ;;  %s5892_s6 = sld [smem:[#allocation17_spill]] }
 0x3a3   : > { %s3797_s9 = sand.u32 1, %s4977_s18  }
 0x3a4   : > { %s3798_s12 = scalar_lea.sflag [#allocation4], %s3797_s9 }
 0x3a8   : > { %p5893_p1 = scmp.ne.s32.totalorder %s5891_s8, 0  ;;  %p5894_p7 = scmp.ge.s32.totalorder %s5892_s6, 2 }
 0x3aa   : > { %p4567_p9 = pnand %p5894_p7, %p5893_p1 }
 0x3ac   : > { %4972 = dma.done.wait (!%p4567_p9), %s3798_s12, 32  }
 0x3ad   : > { %4974 = vsyncadd (!%p4567_p9), %s3798_s12, 4294967264  ;;  %s25_s23 = sadd.s32 1, %s5892_s6   ;;  %s5895_s14 = sld [smem:[#allocation16_spill]] }
 0x3ae   : > { %p22_p10 = scmp.ge.s32.totalorder %s25_s23, 4   ;;  %s5896_s20 = sld [smem:[#allocation19_spill]] }
 0x3af   : > { %s5897_s16 = sld [smem:[#allocation18_spill]]  ;;  %s5898_s18 = smov %s4981_s19 }
 0x3b0   : > { %s5900_s21 = smov %s4993_s22  ;;  %24 = sbr.rel (!%p22_p10) target bundleno = 12 (0xc), region = 137 }
 0x3b3   : > { %s5899_s19 = smov %s5895_s14 }
 0x3b5   : > { %s5901_s22 = smov %s5897_s16 }
 0x3b7   :  { %3803 = vsyncpa [#allocation3], 1 }
 0x3b8   :  { %3805 = vsyncpa [#allocation3 + $0x1], 1 }
 0x3b9   :  { %3806 = vsyncpa [#allocation6], 1 }
 0x3ba   :  { %3808 = vsyncpa [#allocation6 + $0x1], 1 }
 0x3bb   :  { %3809 = vsyncpa [#allocation9], 1 }
 0x3bc   :  { %3811 = vsyncpa [#allocation9 + $0x1], 1 }
 0x3bd   :  { %3812 = vsyncpa [#allocation4], 1 }
 0x3be   :  { %3814 = vsyncpa [#allocation4 + $0x1], 1 }

</bundles_post_ra>
